<compile_context>
chip_gen: v6e
topology: v6e:2x2x1
jax: 0.10.0
libtpu: 0.0.40
codegen_flags: <defaults>
</compile_context>

<pallas_src>
import jax
import jax.numpy as jnp
from jax.experimental import pallas as pl
from jax.experimental.pallas import tpu as pltpu

HIDDEN = 128          # torch.nn.LSTM(hidden_size=128)
DENSE = 256           # torch.nn.Linear(128, 256)
LANE = 128            # TPU lane width; classifier output padded to this
NEG_PAD = -1e30       # bias for padded logit columns -> softmax weight 0


# ------------------------- fused LSTM + head kernel ------------------------- #
def rnn_classifier_kernel(x_ref, wih_ref, whh_ref, bl_ref,
                          w1_ref, b1_ref, w2_ref, b2_ref,
                          logits_ref, probs_ref, xp_ref):
    """One batch tile. x_ref is a time-major (T*TB, E) bf16 slab where row
    t*TB + b is local batch row b at time t."""
    TB = logits_ref.shape[0]
    H = whh_ref.shape[0]
    T = x_ref.shape[0] // TB

    # ---- single time-parallel input projection (all T steps in one matmul) ----
    # (T*TB,E)bf16 @ (E,4H)bf16 -> f32, + bias broadcast once; scratch-backed so
    # the recurrence reads cheap static sublane slices instead of holding T live
    # (TB,4H) values in vregs.
    xp_ref[...] = (
        jnp.dot(x_ref[...], wih_ref[...], preferred_element_type=jnp.float32)
        + bl_ref[...]
    )

    # ---- serial LSTM recurrence, fully unrolled (PyTorch gate order i,f,g,o) ----
    # whh is loop-invariant across the unroll; the compiler keeps it resident.
    # TODO(synk): explicit weight-stationary MXU driving (matmul_push_rhs /
    # matmul_acc_lhs) not used; relying on Mosaic for the (H,4H) weight reuse.
    whh = whh_ref[...]                                    # (H, 4H) bf16
    h = jnp.zeros((TB, H), jnp.float32)
    c = jnp.zeros((TB, H), jnp.float32)
    for t in range(T):
        gates = xp_ref[pl.ds(t * TB, TB), :] + jnp.dot(
            h.astype(jnp.bfloat16), whh, preferred_element_type=jnp.float32)
        i_g = jax.nn.sigmoid(gates[:, 0 * H:1 * H])
        f_g = jax.nn.sigmoid(gates[:, 1 * H:2 * H])
        g_g = jnp.tanh(gates[:, 2 * H:3 * H])
        o_g = jax.nn.sigmoid(gates[:, 3 * H:4 * H])
        c = f_g * c + i_g * g_g
        h = o_g * jnp.tanh(c)                             # h_T == torch h_n[0]

    # ---- fused dense head + softmax (bf16 MXU operands, f32 accumulate) ----
    # TODO(synk): training-mode Dropout not implemented (identity in eval mode).
    hid = jnp.dot(h.astype(jnp.bfloat16), w1_ref[...],
                  preferred_element_type=jnp.float32) + b1_ref[...]
    hid = jnp.maximum(hid, 0.0)                           # ReLU
    logits = jnp.dot(hid.astype(jnp.bfloat16), w2_ref[...],
                     preferred_element_type=jnp.float32) + b2_ref[...]
    logits_ref[...] = logits                              # (TB, 128) lane-dense store
    m = jnp.max(logits, axis=-1, keepdims=True)
    e = jnp.exp(logits - m)                               # padded cols -> exp(-1e30) = 0
    probs_ref[...] = e * pl.reciprocal(
        jnp.sum(e, axis=-1, keepdims=True), approx=True)


# ------------------------------- Full forward ------------------------------- #
def rnn_classifier_forward(embeds, mask, params, *, n_topics, batch_tile=128):
    """embeds: (B, T, E) batch-first, like torch. mask is unused (the torch
    reference never uses it in forward())."""
    del mask
    B, T, E = embeds.shape
    H = params["whh_t"].shape[0]
    nt_pad = params["w2"].shape[1]

    # batch tile: multiple of 8 sublanes dividing B, else whole batch (grid of 1)
    if batch_tile % 8 == 0 and B % batch_tile == 0:
        TB = batch_tile
    else:
        TB = B
    nb = B // TB

    # time-major, batch-tiled slab (HBM plumbing done by XLA outside the kernel):
    #   x_tiled[i, t*TB + b, :] == embeds[i*TB + b, t, :]
    x_tiled = (embeds.astype(jnp.bfloat16)
               .reshape(nb, TB, T, E)
               .transpose(0, 2, 1, 3)
               .reshape(nb, T * TB, E))

    flops = 2 * B * (T * (E + H) * 4 * H + H * DENSE + DENSE * nt_pad)
    transcendentals = B * (T * 5 * H + nt_pad + 1)
    bytes_accessed = (
        x_tiled.size * x_tiled.dtype.itemsize
        + sum(int(v.size) * v.dtype.itemsize for v in params.values())
        + 2 * B * nt_pad * 4)

    grid_spec = pltpu.PrefetchScalarGridSpec(
        num_scalar_prefetch=0,
        grid=(nb,),
        in_specs=[
            pl.BlockSpec((None, T * TB, E), lambda i: (i, 0, 0)),   # x (batch tile)
            pl.BlockSpec((E, 4 * H), lambda i: (0, 0)),             # W_ih^T (resident)
            pl.BlockSpec((H, 4 * H), lambda i: (0, 0)),             # W_hh^T (resident)
            pl.BlockSpec((1, 4 * H), lambda i: (0, 0)),             # b_ih + b_hh
            pl.BlockSpec((H, DENSE), lambda i: (0, 0)),             # W1 (resident)
            pl.BlockSpec((1, DENSE), lambda i: (0, 0)),             # b1
            pl.BlockSpec((DENSE, nt_pad), lambda i: (0, 0)),        # W2 (lane-padded)
            pl.BlockSpec((1, nt_pad), lambda i: (0, 0)),            # b2 (lane-padded)
        ],
        out_specs=[
            pl.BlockSpec((TB, nt_pad), lambda i: (i, 0)),           # logits
            pl.BlockSpec((TB, nt_pad), lambda i: (i, 0)),           # probs
        ],
        scratch_shapes=[pltpu.VMEM((T * TB, 4 * H), jnp.float32)],  # x-projection
    )

    logits_pad, probs_pad = pl.pallas_call(
        rnn_classifier_kernel,
        out_shape=(
            jax.ShapeDtypeStruct((B, nt_pad), jnp.float32),
            jax.ShapeDtypeStruct((B, nt_pad), jnp.float32),
        ),
        grid_spec=grid_spec,
        compiler_params=pltpu.CompilerParams(
            dimension_semantics=("parallel",),
            vmem_limit_bytes=32 * 1024 * 1024,  # safe on v5e/v6e (128 MiB) & v7x (64 MiB)
        ),
        cost_estimate=pl.CostEstimate(
            flops=flops,
            transcendentals=transcendentals,
            bytes_accessed=bytes_accessed),
    )(x_tiled, params["wih_t"], params["whh_t"], params["lstm_bias"],
      params["w1"], params["b1"], params["w2"], params["b2"])

    # slice off the lane padding (padded logits == -1e30, padded probs == 0)
    return logits_pad[:, :n_topics], probs_pad[:, :n_topics]


def init_params(key, embedding_dim, n_topics):
    H, D = HIDDEN, DENSE
    nt_pad = max(LANE, ((n_topics + LANE - 1) // LANE) * LANE)
    ks = jax.random.split(key, 8)
    s = 0.05
    w_ih = s * jax.random.normal(ks[0], (4 * H, embedding_dim), jnp.float32)
    w_hh = s * jax.random.normal(ks[1], (4 * H, H), jnp.float32)
    b_ih = s * jax.random.normal(ks[2], (4 * H,), jnp.float32)
    b_hh = s * jax.random.normal(ks[3], (4 * H,), jnp.float32)
    w1 = s * jax.random.normal(ks[4], (H, D), jnp.float32)
    b1 = s * jax.random.normal(ks[5], (D,), jnp.float32)
    w2 = s * jax.random.normal(ks[6], (D, n_topics), jnp.float32)
    b2 = s * jax.random.normal(ks[7], (n_topics,), jnp.float32)
    # pad classifier weight/bias to a lane-dense (., 128) output
    w2_pad = jnp.zeros((D, nt_pad), jnp.float32).at[:, :n_topics].set(w2)
    b2_pad = jnp.full((1, nt_pad), NEG_PAD, jnp.float32).at[0, :n_topics].set(b2)
    return {
        # MXU operands stored in bf16 (halves weight DMA; f32 accumulate in kernel)
        "wih_t": w_ih.T.astype(jnp.bfloat16),             # (E, 4H)
        "whh_t": w_hh.T.astype(jnp.bfloat16),             # (H, 4H)
        "w1": w1.astype(jnp.bfloat16),                    # (H, D)
        "w2": w2_pad.astype(jnp.bfloat16),                # (D, nt_pad)
        # elementwise / bias path stays f32
        "lstm_bias": (b_ih + b_hh).reshape(1, 4 * H),     # (1, 4H)
        "b1": b1.reshape(1, D),                           # (1, D)
        "b2": b2_pad,                                     # (1, nt_pad)
    }


def reference_forward(embeds, params, n_topics):
    """Pure-JAX f32 reference of the torch forward (eval mode)."""
    wih = params["wih_t"].astype(jnp.float32)
    whh = params["whh_t"].astype(jnp.float32)
    bl = params["lstm_bias"]
    w1 = params["w1"].astype(jnp.float32)
    b1 = params["b1"]
    w2 = params["w2"].astype(jnp.float32)[:, :n_topics]
    b2 = params["b2"][:, :n_topics]
    B, T, _ = embeds.shape
    H = whh.shape[0]
    h = jnp.zeros((B, H), jnp.float32)
    c = jnp.zeros((B, H), jnp.float32)
    for t in range(T):
        g = embeds[:, t, :] @ wih + bl + h @ whh
        i_g = jax.nn.sigmoid(g[:, :H])
        f_g = jax.nn.sigmoid(g[:, H:2 * H])
        g_g = jnp.tanh(g[:, 2 * H:3 * H])
        o_g = jax.nn.sigmoid(g[:, 3 * H:])
        c = f_g * c + i_g * g_g
        h = o_g * jnp.tanh(c)
    hid = jnp.maximum(h @ w1 + b1, 0.0)
    logits = hid @ w2 + b2
    probs = jax.nn.softmax(logits, axis=1)
    return logits, probs


if __name__ == "__main__":
    B, T, E, NT = 16, 8, 32, 8   # batch (2 tiles of 8), seq, embedding_dim, n_topics
    key = jax.random.PRNGKey(0)
    k_x, k_p = jax.random.split(key)
    embeds = jax.random.normal(k_x, (B, T, E), jnp.float32)   # batch_first like torch
    mask = jnp.ones((B, T), jnp.float32)                      # unused (matches torch ref)
    params = init_params(k_p, E, NT)

    fwd = jax.jit(rnn_classifier_forward, static_argnames=("n_topics", "batch_tile"))
    logits, probs = fwd(embeds, mask, params, n_topics=NT, batch_tile=8)
    jax.block_until_ready((logits, probs))

    assert logits.shape == (B, NT) and probs.shape == (B, NT)
    assert bool(jnp.all(jnp.isfinite(logits))) and bool(jnp.all(jnp.isfinite(probs)))
    assert bool(jnp.allclose(jnp.sum(probs, axis=1), 1.0, atol=5e-3))

    ref_logits, ref_probs = reference_forward(embeds, params, NT)
    assert bool(jnp.max(jnp.abs(probs - ref_probs)) < 2e-2), \
        float(jnp.max(jnp.abs(probs - ref_probs)))
    assert bool(jnp.max(jnp.abs(logits - ref_logits)) < 5e-2), \
        float(jnp.max(jnp.abs(logits - ref_logits)))
    print("KERNEL_OK")
</pallas_src>

<mosaic_0001>
module attributes {stable_mosaic.version = 11 : i64} {
  func.func @rnn_classifier_kernel(%arg0: i32, %arg1: memref<1x64x32xbf16, #tpu.memory_space<vmem>>, %arg2: memref<32x512xbf16, #tpu.memory_space<vmem>>, %arg3: memref<128x512xbf16, #tpu.memory_space<vmem>>, %arg4: memref<1x512xf32, #tpu.memory_space<vmem>>, %arg5: memref<128x256xbf16, #tpu.memory_space<vmem>>, %arg6: memref<1x256xf32, #tpu.memory_space<vmem>>, %arg7: memref<256x128xbf16, #tpu.memory_space<vmem>>, %arg8: memref<1x128xf32, #tpu.memory_space<vmem>>, %arg9: memref<8x128xf32, #tpu.memory_space<vmem>>, %arg10: memref<8x128xf32, #tpu.memory_space<vmem>>, %arg11: memref<64x512xf32, #tpu.memory_space<vmem>>) attributes {dimension_semantics = [#tpu.dimension_semantics<parallel>], iteration_bounds = array<i64: 2>, scalar_prefetch = 0 : i64, scratch_operands = 1 : i64, tpu.core_type = #tpu.core_type<tc>, window_params = [{transform_indices = @transform_0, window_bounds = array<i64: 1, 64, 32>}, {pipeline_mode = #tpu.pipeline_mode<synchronous>, transform_indices = @transform_1, window_bounds = array<i64: 32, 512>}, {pipeline_mode = #tpu.pipeline_mode<synchronous>, transform_indices = @transform_2, window_bounds = array<i64: 128, 512>}, {pipeline_mode = #tpu.pipeline_mode<synchronous>, transform_indices = @transform_3, window_bounds = array<i64: 1, 512>}, {pipeline_mode = #tpu.pipeline_mode<synchronous>, transform_indices = @transform_4, window_bounds = array<i64: 128, 256>}, {pipeline_mode = #tpu.pipeline_mode<synchronous>, transform_indices = @transform_5, window_bounds = array<i64: 1, 256>}, {pipeline_mode = #tpu.pipeline_mode<synchronous>, transform_indices = @transform_6, window_bounds = array<i64: 256, 128>}, {pipeline_mode = #tpu.pipeline_mode<synchronous>, transform_indices = @transform_7, window_bounds = array<i64: 1, 128>}, {transform_indices = @transform_8, window_bounds = array<i64: 8, 128>}, {transform_indices = @transform_9, window_bounds = array<i64: 8, 128>}]} {
    %c0 = arith.constant 0 : index
    %c0_0 = arith.constant 0 : index
    %c0_1 = arith.constant 0 : index
    %0 = vector.load %arg1[%c0, %c0_0, %c0_1] : memref<1x64x32xbf16, #tpu.memory_space<vmem>>, vector<1x64x32xbf16>
    %1 = vector.shape_cast %0 : vector<1x64x32xbf16> to vector<64x32xbf16>
    %c0_2 = arith.constant 0 : index
    %c0_3 = arith.constant 0 : index
    %2 = vector.load %arg2[%c0_2, %c0_3] : memref<32x512xbf16, #tpu.memory_space<vmem>>, vector<32x512xbf16>
    %cst = arith.constant dense<0.000000e+00> : vector<64x512xf32>
    %3 = tpu.matmul %1, %2, %cst {dimension_numbers = #tpu.dot_dimension_numbers<[1], [0], [0], [1], [0, 0, 1, 1], [], []>} : vector<64x32xbf16>, vector<32x512xbf16>, vector<64x512xf32> -> vector<64x512xf32>
    %c0_4 = arith.constant 0 : index
    %c0_5 = arith.constant 0 : index
    %4 = vector.load %arg4[%c0_4, %c0_5] : memref<1x512xf32, #tpu.memory_space<vmem>>, vector<1x512xf32>
    %5 = vector.broadcast %4 : vector<1x512xf32> to vector<64x512xf32>
    %6 = arith.addf %3, %5 : vector<64x512xf32>
    %c0_6 = arith.constant 0 : index
    %c0_7 = arith.constant 0 : index
    %7 = vector.load %arg11[%c0_6, %c0_7] : memref<64x512xf32, #tpu.memory_space<vmem>>, vector<64x512xf32>
    tpu.vector_store %arg11[%c0_6, %c0_7], %6 {strides = array<i32>} : memref<64x512xf32, #tpu.memory_space<vmem>>, vector<64x512xf32>,
    %c0_8 = arith.constant 0 : index
    %c0_9 = arith.constant 0 : index
    %8 = vector.load %arg3[%c0_8, %c0_9] : memref<128x512xbf16, #tpu.memory_space<vmem>>, vector<128x512xbf16>
    %cst_10 = arith.constant 0.000000e+00 : f32
    %9 = vector.broadcast %cst_10 : f32 to vector<8x128xf32>
    %cst_11 = arith.constant 0.000000e+00 : f32
    %10 = vector.broadcast %cst_11 : f32 to vector<8x128xf32>
    %c0_12 = arith.constant 0 : index
    %c0_13 = arith.constant 0 : index
    %11 = vector.load %arg11[%c0_12, %c0_13] : memref<64x512xf32, #tpu.memory_space<vmem>>, vector<8x512xf32>
    %12 = arith.truncf %9 : vector<8x128xf32> to vector<8x128xbf16>
    %cst_14 = arith.constant dense<0.000000e+00> : vector<8x512xf32>
    %13 = tpu.matmul %12, %8, %cst_14 {dimension_numbers = #tpu.dot_dimension_numbers<[1], [0], [0], [1], [0, 0, 1, 1], [], []>} : vector<8x128xbf16>, vector<128x512xbf16>, vector<8x512xf32> -> vector<8x512xf32>
    %14 = arith.addf %11, %13 : vector<8x512xf32>
    %15 = vector.extract_strided_slice %14 {offsets = [0, 0], sizes = [8, 128], strides = [1, 1]} : vector<8x512xf32> to vector<8x128xf32>
    %16 = arith.negf %15 : vector<8x128xf32>
    %17 = math.exp %16 : vector<8x128xf32>
    %cst_15 = arith.constant 1.000000e+00 : f32
    %18 = vector.broadcast %cst_15 : f32 to vector<8x128xf32>
    %19 = arith.addf %18, %17 : vector<8x128xf32>
    %20 = arith.divf %18, %19 : vector<8x128xf32>
    %21 = vector.extract_strided_slice %14 {offsets = [0, 128], sizes = [8, 128], strides = [1, 1]} : vector<8x512xf32> to vector<8x128xf32>
    %22 = arith.negf %21 : vector<8x128xf32>
    %23 = math.exp %22 : vector<8x128xf32>
    %cst_16 = arith.constant 1.000000e+00 : f32
    %24 = vector.broadcast %cst_16 : f32 to vector<8x128xf32>
    %25 = arith.addf %24, %23 : vector<8x128xf32>
    %26 = arith.divf %24, %25 : vector<8x128xf32>
    %27 = vector.extract_strided_slice %14 {offsets = [0, 256], sizes = [8, 128], strides = [1, 1]} : vector<8x512xf32> to vector<8x128xf32>
    %28 = math.tanh %27 : vector<8x128xf32>
    %29 = vector.extract_strided_slice %14 {offsets = [0, 384], sizes = [8, 128], strides = [1, 1]} : vector<8x512xf32> to vector<8x128xf32>
    %30 = arith.negf %29 : vector<8x128xf32>
    %31 = math.exp %30 : vector<8x128xf32>
    %cst_17 = arith.constant 1.000000e+00 : f32
    %32 = vector.broadcast %cst_17 : f32 to vector<8x128xf32>
    %33 = arith.addf %32, %31 : vector<8x128xf32>
    %34 = arith.divf %32, %33 : vector<8x128xf32>
    %35 = arith.mulf %26, %10 : vector<8x128xf32>
    %36 = arith.mulf %20, %28 : vector<8x128xf32>
    %37 = arith.addf %35, %36 : vector<8x128xf32>
    %38 = math.tanh %37 : vector<8x128xf32>
    %39 = arith.mulf %34, %38 : vector<8x128xf32>
    %c8 = arith.constant 8 : index
    %c0_18 = arith.constant 0 : index
    %40 = vector.load %arg11[%c8, %c0_18] : memref<64x512xf32, #tpu.memory_space<vmem>>, vector<8x512xf32>
    %41 = arith.truncf %39 : vector<8x128xf32> to vector<8x128xbf16>
    %cst_19 = arith.constant dense<0.000000e+00> : vector<8x512xf32>
    %42 = tpu.matmul %41, %8, %cst_19 {dimension_numbers = #tpu.dot_dimension_numbers<[1], [0], [0], [1], [0, 0, 1, 1], [], []>} : vector<8x128xbf16>, vector<128x512xbf16>, vector<8x512xf32> -> vector<8x512xf32>
    %43 = arith.addf %40, %42 : vector<8x512xf32>
    %44 = vector.extract_strided_slice %43 {offsets = [0, 0], sizes = [8, 128], strides = [1, 1]} : vector<8x512xf32> to vector<8x128xf32>
    %45 = arith.negf %44 : vector<8x128xf32>
    %46 = math.exp %45 : vector<8x128xf32>
    %cst_20 = arith.constant 1.000000e+00 : f32
    %47 = vector.broadcast %cst_20 : f32 to vector<8x128xf32>
    %48 = arith.addf %47, %46 : vector<8x128xf32>
    %49 = arith.divf %47, %48 : vector<8x128xf32>
    %50 = vector.extract_strided_slice %43 {offsets = [0, 128], sizes = [8, 128], strides = [1, 1]} : vector<8x512xf32> to vector<8x128xf32>
    %51 = arith.negf %50 : vector<8x128xf32>
    %52 = math.exp %51 : vector<8x128xf32>
    %cst_21 = arith.constant 1.000000e+00 : f32
    %53 = vector.broadcast %cst_21 : f32 to vector<8x128xf32>
    %54 = arith.addf %53, %52 : vector<8x128xf32>
    %55 = arith.divf %53, %54 : vector<8x128xf32>
    %56 = vector.extract_strided_slice %43 {offsets = [0, 256], sizes = [8, 128], strides = [1, 1]} : vector<8x512xf32> to vector<8x128xf32>
    %57 = math.tanh %56 : vector<8x128xf32>
    %58 = vector.extract_strided_slice %43 {offsets = [0, 384], sizes = [8, 128], strides = [1, 1]} : vector<8x512xf32> to vector<8x128xf32>
    %59 = arith.negf %58 : vector<8x128xf32>
    %60 = math.exp %59 : vector<8x128xf32>
    %cst_22 = arith.constant 1.000000e+00 : f32
    %61 = vector.broadcast %cst_22 : f32 to vector<8x128xf32>
    %62 = arith.addf %61, %60 : vector<8x128xf32>
    %63 = arith.divf %61, %62 : vector<8x128xf32>
    %64 = arith.mulf %55, %37 : vector<8x128xf32>
    %65 = arith.mulf %49, %57 : vector<8x128xf32>
    %66 = arith.addf %64, %65 : vector<8x128xf32>
    %67 = math.tanh %66 : vector<8x128xf32>
    %68 = arith.mulf %63, %67 : vector<8x128xf32>
    %c16 = arith.constant 16 : index
    %c0_23 = arith.constant 0 : index
    %69 = vector.load %arg11[%c16, %c0_23] : memref<64x512xf32, #tpu.memory_space<vmem>>, vector<8x512xf32>
    %70 = arith.truncf %68 : vector<8x128xf32> to vector<8x128xbf16>
    %cst_24 = arith.constant dense<0.000000e+00> : vector<8x512xf32>
    %71 = tpu.matmul %70, %8, %cst_24 {dimension_numbers = #tpu.dot_dimension_numbers<[1], [0], [0], [1], [0, 0, 1, 1], [], []>} : vector<8x128xbf16>, vector<128x512xbf16>, vector<8x512xf32> -> vector<8x512xf32>
    %72 = arith.addf %69, %71 : vector<8x512xf32>
    %73 = vector.extract_strided_slice %72 {offsets = [0, 0], sizes = [8, 128], strides = [1, 1]} : vector<8x512xf32> to vector<8x128xf32>
    %74 = arith.negf %73 : vector<8x128xf32>
    %75 = math.exp %74 : vector<8x128xf32>
    %cst_25 = arith.constant 1.000000e+00 : f32
    %76 = vector.broadcast %cst_25 : f32 to vector<8x128xf32>
    %77 = arith.addf %76, %75 : vector<8x128xf32>
    %78 = arith.divf %76, %77 : vector<8x128xf32>
    %79 = vector.extract_strided_slice %72 {offsets = [0, 128], sizes = [8, 128], strides = [1, 1]} : vector<8x512xf32> to vector<8x128xf32>
    %80 = arith.negf %79 : vector<8x128xf32>
    %81 = math.exp %80 : vector<8x128xf32>
    %cst_26 = arith.constant 1.000000e+00 : f32
    %82 = vector.broadcast %cst_26 : f32 to vector<8x128xf32>
    %83 = arith.addf %82, %81 : vector<8x128xf32>
    %84 = arith.divf %82, %83 : vector<8x128xf32>
    %85 = vector.extract_strided_slice %72 {offsets = [0, 256], sizes = [8, 128], strides = [1, 1]} : vector<8x512xf32> to vector<8x128xf32>
    %86 = math.tanh %85 : vector<8x128xf32>
    %87 = vector.extract_strided_slice %72 {offsets = [0, 384], sizes = [8, 128], strides = [1, 1]} : vector<8x512xf32> to vector<8x128xf32>
    %88 = arith.negf %87 : vector<8x128xf32>
    %89 = math.exp %88 : vector<8x128xf32>
    %cst_27 = arith.constant 1.000000e+00 : f32
    %90 = vector.broadcast %cst_27 : f32 to vector<8x128xf32>
    %91 = arith.addf %90, %89 : vector<8x128xf32>
    %92 = arith.divf %90, %91 : vector<8x128xf32>
    %93 = arith.mulf %84, %66 : vector<8x128xf32>
    %94 = arith.mulf %78, %86 : vector<8x128xf32>
    %95 = arith.addf %93, %94 : vector<8x128xf32>
    %96 = math.tanh %95 : vector<8x128xf32>
    %97 = arith.mulf %92, %96 : vector<8x128xf32>
    %c24 = arith.constant 24 : index
    %c0_28 = arith.constant 0 : index
    %98 = vector.load %arg11[%c24, %c0_28] : memref<64x512xf32, #tpu.memory_space<vmem>>, vector<8x512xf32>
    %99 = arith.truncf %97 : vector<8x128xf32> to vector<8x128xbf16>
    %cst_29 = arith.constant dense<0.000000e+00> : vector<8x512xf32>
    %100 = tpu.matmul %99, %8, %cst_29 {dimension_numbers = #tpu.dot_dimension_numbers<[1], [0], [0], [1], [0, 0, 1, 1], [], []>} : vector<8x128xbf16>, vector<128x512xbf16>, vector<8x512xf32> -> vector<8x512xf32>
    %101 = arith.addf %98, %100 : vector<8x512xf32>
    %102 = vector.extract_strided_slice %101 {offsets = [0, 0], sizes = [8, 128], strides = [1, 1]} : vector<8x512xf32> to vector<8x128xf32>
    %103 = arith.negf %102 : vector<8x128xf32>
    %104 = math.exp %103 : vector<8x128xf32>
    %cst_30 = arith.constant 1.000000e+00 : f32
    %105 = vector.broadcast %cst_30 : f32 to vector<8x128xf32>
    %106 = arith.addf %105, %104 : vector<8x128xf32>
    %107 = arith.divf %105, %106 : vector<8x128xf32>
    %108 = vector.extract_strided_slice %101 {offsets = [0, 128], sizes = [8, 128], strides = [1, 1]} : vector<8x512xf32> to vector<8x128xf32>
    %109 = arith.negf %108 : vector<8x128xf32>
    %110 = math.exp %109 : vector<8x128xf32>
    %cst_31 = arith.constant 1.000000e+00 : f32
    %111 = vector.broadcast %cst_31 : f32 to vector<8x128xf32>
    %112 = arith.addf %111, %110 : vector<8x128xf32>
    %113 = arith.divf %111, %112 : vector<8x128xf32>
    %114 = vector.extract_strided_slice %101 {offsets = [0, 256], sizes = [8, 128], strides = [1, 1]} : vector<8x512xf32> to vector<8x128xf32>
    %115 = math.tanh %114 : vector<8x128xf32>
    %116 = vector.extract_strided_slice %101 {offsets = [0, 384], sizes = [8, 128], strides = [1, 1]} : vector<8x512xf32> to vector<8x128xf32>
    %117 = arith.negf %116 : vector<8x128xf32>
    %118 = math.exp %117 : vector<8x128xf32>
    %cst_32 = arith.constant 1.000000e+00 : f32
    %119 = vector.broadcast %cst_32 : f32 to vector<8x128xf32>
    %120 = arith.addf %119, %118 : vector<8x128xf32>
    %121 = arith.divf %119, %120 : vector<8x128xf32>
    %122 = arith.mulf %113, %95 : vector<8x128xf32>
    %123 = arith.mulf %107, %115 : vector<8x128xf32>
    %124 = arith.addf %122, %123 : vector<8x128xf32>
    %125 = math.tanh %124 : vector<8x128xf32>
    %126 = arith.mulf %121, %125 : vector<8x128xf32>
    %c32 = arith.constant 32 : index
    %c0_33 = arith.constant 0 : index
    %127 = vector.load %arg11[%c32, %c0_33] : memref<64x512xf32, #tpu.memory_space<vmem>>, vector<8x512xf32>
    %128 = arith.truncf %126 : vector<8x128xf32> to vector<8x128xbf16>
    %cst_34 = arith.constant dense<0.000000e+00> : vector<8x512xf32>
    %129 = tpu.matmul %128, %8, %cst_34 {dimension_numbers = #tpu.dot_dimension_numbers<[1], [0], [0], [1], [0, 0, 1, 1], [], []>} : vector<8x128xbf16>, vector<128x512xbf16>, vector<8x512xf32> -> vector<8x512xf32>
    %130 = arith.addf %127, %129 : vector<8x512xf32>
    %131 = vector.extract_strided_slice %130 {offsets = [0, 0], sizes = [8, 128], strides = [1, 1]} : vector<8x512xf32> to vector<8x128xf32>
    %132 = arith.negf %131 : vector<8x128xf32>
    %133 = math.exp %132 : vector<8x128xf32>
    %cst_35 = arith.constant 1.000000e+00 : f32
    %134 = vector.broadcast %cst_35 : f32 to vector<8x128xf32>
    %135 = arith.addf %134, %133 : vector<8x128xf32>
    %136 = arith.divf %134, %135 : vector<8x128xf32>
    %137 = vector.extract_strided_slice %130 {offsets = [0, 128], sizes = [8, 128], strides = [1, 1]} : vector<8x512xf32> to vector<8x128xf32>
    %138 = arith.negf %137 : vector<8x128xf32>
    %139 = math.exp %138 : vector<8x128xf32>
    %cst_36 = arith.constant 1.000000e+00 : f32
    %140 = vector.broadcast %cst_36 : f32 to vector<8x128xf32>
    %141 = arith.addf %140, %139 : vector<8x128xf32>
    %142 = arith.divf %140, %141 : vector<8x128xf32>
    %143 = vector.extract_strided_slice %130 {offsets = [0, 256], sizes = [8, 128], strides = [1, 1]} : vector<8x512xf32> to vector<8x128xf32>
    %144 = math.tanh %143 : vector<8x128xf32>
    %145 = vector.extract_strided_slice %130 {offsets = [0, 384], sizes = [8, 128], strides = [1, 1]} : vector<8x512xf32> to vector<8x128xf32>
    %146 = arith.negf %145 : vector<8x128xf32>
    %147 = math.exp %146 : vector<8x128xf32>
    %cst_37 = arith.constant 1.000000e+00 : f32
    %148 = vector.broadcast %cst_37 : f32 to vector<8x128xf32>
    %149 = arith.addf %148, %147 : vector<8x128xf32>
    %150 = arith.divf %148, %149 : vector<8x128xf32>
    %151 = arith.mulf %142, %124 : vector<8x128xf32>
    %152 = arith.mulf %136, %144 : vector<8x128xf32>
    %153 = arith.addf %151, %152 : vector<8x128xf32>
    %154 = math.tanh %153 : vector<8x128xf32>
    %155 = arith.mulf %150, %154 : vector<8x128xf32>
    %c40 = arith.constant 40 : index
    %c0_38 = arith.constant 0 : index
    %156 = vector.load %arg11[%c40, %c0_38] : memref<64x512xf32, #tpu.memory_space<vmem>>, vector<8x512xf32>
    %157 = arith.truncf %155 : vector<8x128xf32> to vector<8x128xbf16>
    %cst_39 = arith.constant dense<0.000000e+00> : vector<8x512xf32>
    %158 = tpu.matmul %157, %8, %cst_39 {dimension_numbers = #tpu.dot_dimension_numbers<[1], [0], [0], [1], [0, 0, 1, 1], [], []>} : vector<8x128xbf16>, vector<128x512xbf16>, vector<8x512xf32> -> vector<8x512xf32>
    %159 = arith.addf %156, %158 : vector<8x512xf32>
    %160 = vector.extract_strided_slice %159 {offsets = [0, 0], sizes = [8, 128], strides = [1, 1]} : vector<8x512xf32> to vector<8x128xf32>
    %161 = arith.negf %160 : vector<8x128xf32>
    %162 = math.exp %161 : vector<8x128xf32>
    %cst_40 = arith.constant 1.000000e+00 : f32
    %163 = vector.broadcast %cst_40 : f32 to vector<8x128xf32>
    %164 = arith.addf %163, %162 : vector<8x128xf32>
    %165 = arith.divf %163, %164 : vector<8x128xf32>
    %166 = vector.extract_strided_slice %159 {offsets = [0, 128], sizes = [8, 128], strides = [1, 1]} : vector<8x512xf32> to vector<8x128xf32>
    %167 = arith.negf %166 : vector<8x128xf32>
    %168 = math.exp %167 : vector<8x128xf32>
    %cst_41 = arith.constant 1.000000e+00 : f32
    %169 = vector.broadcast %cst_41 : f32 to vector<8x128xf32>
    %170 = arith.addf %169, %168 : vector<8x128xf32>
    %171 = arith.divf %169, %170 : vector<8x128xf32>
    %172 = vector.extract_strided_slice %159 {offsets = [0, 256], sizes = [8, 128], strides = [1, 1]} : vector<8x512xf32> to vector<8x128xf32>
    %173 = math.tanh %172 : vector<8x128xf32>
    %174 = vector.extract_strided_slice %159 {offsets = [0, 384], sizes = [8, 128], strides = [1, 1]} : vector<8x512xf32> to vector<8x128xf32>
    %175 = arith.negf %174 : vector<8x128xf32>
    %176 = math.exp %175 : vector<8x128xf32>
    %cst_42 = arith.constant 1.000000e+00 : f32
    %177 = vector.broadcast %cst_42 : f32 to vector<8x128xf32>
    %178 = arith.addf %177, %176 : vector<8x128xf32>
    %179 = arith.divf %177, %178 : vector<8x128xf32>
    %180 = arith.mulf %171, %153 : vector<8x128xf32>
    %181 = arith.mulf %165, %173 : vector<8x128xf32>
    %182 = arith.addf %180, %181 : vector<8x128xf32>
    %183 = math.tanh %182 : vector<8x128xf32>
    %184 = arith.mulf %179, %183 : vector<8x128xf32>
    %c48 = arith.constant 48 : index
    %c0_43 = arith.constant 0 : index
    %185 = vector.load %arg11[%c48, %c0_43] : memref<64x512xf32, #tpu.memory_space<vmem>>, vector<8x512xf32>
    %186 = arith.truncf %184 : vector<8x128xf32> to vector<8x128xbf16>
    %cst_44 = arith.constant dense<0.000000e+00> : vector<8x512xf32>
    %187 = tpu.matmul %186, %8, %cst_44 {dimension_numbers = #tpu.dot_dimension_numbers<[1], [0], [0], [1], [0, 0, 1, 1], [], []>} : vector<8x128xbf16>, vector<128x512xbf16>, vector<8x512xf32> -> vector<8x512xf32>
    %188 = arith.addf %185, %187 : vector<8x512xf32>
    %189 = vector.extract_strided_slice %188 {offsets = [0, 0], sizes = [8, 128], strides = [1, 1]} : vector<8x512xf32> to vector<8x128xf32>
    %190 = arith.negf %189 : vector<8x128xf32>
    %191 = math.exp %190 : vector<8x128xf32>
    %cst_45 = arith.constant 1.000000e+00 : f32
    %192 = vector.broadcast %cst_45 : f32 to vector<8x128xf32>
    %193 = arith.addf %192, %191 : vector<8x128xf32>
    %194 = arith.divf %192, %193 : vector<8x128xf32>
    %195 = vector.extract_strided_slice %188 {offsets = [0, 128], sizes = [8, 128], strides = [1, 1]} : vector<8x512xf32> to vector<8x128xf32>
    %196 = arith.negf %195 : vector<8x128xf32>
    %197 = math.exp %196 : vector<8x128xf32>
    %cst_46 = arith.constant 1.000000e+00 : f32
    %198 = vector.broadcast %cst_46 : f32 to vector<8x128xf32>
    %199 = arith.addf %198, %197 : vector<8x128xf32>
    %200 = arith.divf %198, %199 : vector<8x128xf32>
    %201 = vector.extract_strided_slice %188 {offsets = [0, 256], sizes = [8, 128], strides = [1, 1]} : vector<8x512xf32> to vector<8x128xf32>
    %202 = math.tanh %201 : vector<8x128xf32>
    %203 = vector.extract_strided_slice %188 {offsets = [0, 384], sizes = [8, 128], strides = [1, 1]} : vector<8x512xf32> to vector<8x128xf32>
    %204 = arith.negf %203 : vector<8x128xf32>
    %205 = math.exp %204 : vector<8x128xf32>
    %cst_47 = arith.constant 1.000000e+00 : f32
    %206 = vector.broadcast %cst_47 : f32 to vector<8x128xf32>
    %207 = arith.addf %206, %205 : vector<8x128xf32>
    %208 = arith.divf %206, %207 : vector<8x128xf32>
    %209 = arith.mulf %200, %182 : vector<8x128xf32>
    %210 = arith.mulf %194, %202 : vector<8x128xf32>
    %211 = arith.addf %209, %210 : vector<8x128xf32>
    %212 = math.tanh %211 : vector<8x128xf32>
    %213 = arith.mulf %208, %212 : vector<8x128xf32>
    %c56 = arith.constant 56 : index
    %c0_48 = arith.constant 0 : index
    %214 = vector.load %arg11[%c56, %c0_48] : memref<64x512xf32, #tpu.memory_space<vmem>>, vector<8x512xf32>
    %215 = arith.truncf %213 : vector<8x128xf32> to vector<8x128xbf16>
    %cst_49 = arith.constant dense<0.000000e+00> : vector<8x512xf32>
    %216 = tpu.matmul %215, %8, %cst_49 {dimension_numbers = #tpu.dot_dimension_numbers<[1], [0], [0], [1], [0, 0, 1, 1], [], []>} : vector<8x128xbf16>, vector<128x512xbf16>, vector<8x512xf32> -> vector<8x512xf32>
    %217 = arith.addf %214, %216 : vector<8x512xf32>
    %218 = vector.extract_strided_slice %217 {offsets = [0, 0], sizes = [8, 128], strides = [1, 1]} : vector<8x512xf32> to vector<8x128xf32>
    %219 = arith.negf %218 : vector<8x128xf32>
    %220 = math.exp %219 : vector<8x128xf32>
    %cst_50 = arith.constant 1.000000e+00 : f32
    %221 = vector.broadcast %cst_50 : f32 to vector<8x128xf32>
    %222 = arith.addf %221, %220 : vector<8x128xf32>
    %223 = arith.divf %221, %222 : vector<8x128xf32>
    %224 = vector.extract_strided_slice %217 {offsets = [0, 128], sizes = [8, 128], strides = [1, 1]} : vector<8x512xf32> to vector<8x128xf32>
    %225 = arith.negf %224 : vector<8x128xf32>
    %226 = math.exp %225 : vector<8x128xf32>
    %cst_51 = arith.constant 1.000000e+00 : f32
    %227 = vector.broadcast %cst_51 : f32 to vector<8x128xf32>
    %228 = arith.addf %227, %226 : vector<8x128xf32>
    %229 = arith.divf %227, %228 : vector<8x128xf32>
    %230 = vector.extract_strided_slice %217 {offsets = [0, 256], sizes = [8, 128], strides = [1, 1]} : vector<8x512xf32> to vector<8x128xf32>
    %231 = math.tanh %230 : vector<8x128xf32>
    %232 = vector.extract_strided_slice %217 {offsets = [0, 384], sizes = [8, 128], strides = [1, 1]} : vector<8x512xf32> to vector<8x128xf32>
    %233 = arith.negf %232 : vector<8x128xf32>
    %234 = math.exp %233 : vector<8x128xf32>
    %cst_52 = arith.constant 1.000000e+00 : f32
    %235 = vector.broadcast %cst_52 : f32 to vector<8x128xf32>
    %236 = arith.addf %235, %234 : vector<8x128xf32>
    %237 = arith.divf %235, %236 : vector<8x128xf32>
    %238 = arith.mulf %229, %211 : vector<8x128xf32>
    %239 = arith.mulf %223, %231 : vector<8x128xf32>
    %240 = arith.addf %238, %239 : vector<8x128xf32>
    %241 = math.tanh %240 : vector<8x128xf32>
    %242 = arith.mulf %237, %241 : vector<8x128xf32>
    %243 = arith.truncf %242 : vector<8x128xf32> to vector<8x128xbf16>
    %c0_53 = arith.constant 0 : index
    %c0_54 = arith.constant 0 : index
    %244 = vector.load %arg5[%c0_53, %c0_54] : memref<128x256xbf16, #tpu.memory_space<vmem>>, vector<128x256xbf16>
    %cst_55 = arith.constant dense<0.000000e+00> : vector<8x256xf32>
    %245 = tpu.matmul %243, %244, %cst_55 {dimension_numbers = #tpu.dot_dimension_numbers<[1], [0], [0], [1], [0, 0, 1, 1], [], []>} : vector<8x128xbf16>, vector<128x256xbf16>, vector<8x256xf32> -> vector<8x256xf32>
    %c0_56 = arith.constant 0 : index
    %c0_57 = arith.constant 0 : index
    %246 = vector.load %arg6[%c0_56, %c0_57] : memref<1x256xf32, #tpu.memory_space<vmem>>, vector<1x256xf32>
    %247 = vector.broadcast %246 : vector<1x256xf32> to vector<8x256xf32>
    %248 = arith.addf %245, %247 : vector<8x256xf32>
    %cst_58 = arith.constant 0.000000e+00 : f32
    %249 = vector.broadcast %cst_58 : f32 to vector<8x256xf32>
    %250 = arith.maximumf %248, %249 : vector<8x256xf32>
    %251 = arith.truncf %250 : vector<8x256xf32> to vector<8x256xbf16>
    %c0_59 = arith.constant 0 : index
    %c0_60 = arith.constant 0 : index
    %252 = vector.load %arg7[%c0_59, %c0_60] : memref<256x128xbf16, #tpu.memory_space<vmem>>, vector<256x128xbf16>
    %cst_61 = arith.constant dense<0.000000e+00> : vector<8x128xf32>
    %253 = tpu.matmul %251, %252, %cst_61 {dimension_numbers = #tpu.dot_dimension_numbers<[1], [0], [0], [1], [0, 0, 1, 1], [], []>} : vector<8x256xbf16>, vector<256x128xbf16>, vector<8x128xf32> -> vector<8x128xf32>
    %c0_62 = arith.constant 0 : index
    %c0_63 = arith.constant 0 : index
    %254 = vector.load %arg8[%c0_62, %c0_63] : memref<1x128xf32, #tpu.memory_space<vmem>>, vector<1x128xf32>
    %255 = vector.broadcast %254 : vector<1x128xf32> to vector<8x128xf32>
    %256 = arith.addf %253, %255 : vector<8x128xf32>
    %c0_64 = arith.constant 0 : index
    %c0_65 = arith.constant 0 : index
    %257 = vector.load %arg9[%c0_64, %c0_65] : memref<8x128xf32, #tpu.memory_space<vmem>>, vector<8x128xf32>
    tpu.vector_store %arg9[%c0_64, %c0_65], %256 {strides = array<i32>} : memref<8x128xf32, #tpu.memory_space<vmem>>, vector<8x128xf32>,
    %cst_66 = arith.constant dense<0xFF800000> : vector<8xf32>
    %258 = vector.multi_reduction <maximumf>, %256, %cst_66 [1] : vector<8x128xf32> to vector<8xf32>
    %259 = vector.shape_cast %258 : vector<8xf32> to vector<8x1xf32>
    %260 = vector.broadcast %259 : vector<8x1xf32> to vector<8x128xf32>
    %261 = arith.subf %256, %260 : vector<8x128xf32>
    %262 = math.exp %261 : vector<8x128xf32>
    %cst_67 = arith.constant dense<0.000000e+00> : vector<8xf32>
    %263 = vector.multi_reduction <add>, %262, %cst_67 [1] : vector<8x128xf32> to vector<8xf32>
    %264 = vector.shape_cast %263 : vector<8xf32> to vector<8x1xf32>
    %265 = tpu.reciprocal %264 {approx = true} : vector<8x1xf32> -> vector<8x1xf32>
    %266 = vector.broadcast %265 : vector<8x1xf32> to vector<8x128xf32>
    %267 = arith.mulf %262, %266 : vector<8x128xf32>
    %c0_68 = arith.constant 0 : index
    %c0_69 = arith.constant 0 : index
    %268 = vector.load %arg10[%c0_68, %c0_69] : memref<8x128xf32, #tpu.memory_space<vmem>>, vector<8x128xf32>
    tpu.vector_store %arg10[%c0_68, %c0_69], %267 {strides = array<i32>} : memref<8x128xf32, #tpu.memory_space<vmem>>, vector<8x128xf32>,
    return
  }
  func.func @transform_0(%arg0: i32) -> (i32, i32, i32) {
    %c0_i32 = arith.constant 0 : i32
    %c0_i32_0 = arith.constant 0 : i32
    %c0_i32_1 = arith.constant 0 : i32
    return %arg0, %c0_i32, %c0_i32_0 : i32, i32, i32
  }
  func.func @transform_1(%arg0: i32) -> (i32, i32) {
    %c0_i32 = arith.constant 0 : i32
    %c0_i32_0 = arith.constant 0 : i32
    %c0_i32_1 = arith.constant 0 : i32
    return %c0_i32, %c0_i32_0 : i32, i32
  }
  func.func @transform_2(%arg0: i32) -> (i32, i32) {
    %c0_i32 = arith.constant 0 : i32
    %c0_i32_0 = arith.constant 0 : i32
    %c0_i32_1 = arith.constant 0 : i32
    return %c0_i32, %c0_i32_0 : i32, i32
  }
  func.func @transform_3(%arg0: i32) -> (i32, i32) {
    %c0_i32 = arith.constant 0 : i32
    %c0_i32_0 = arith.constant 0 : i32
    %c0_i32_1 = arith.constant 0 : i32
    return %c0_i32, %c0_i32_0 : i32, i32
  }
  func.func @transform_4(%arg0: i32) -> (i32, i32) {
    %c0_i32 = arith.constant 0 : i32
    %c0_i32_0 = arith.constant 0 : i32
    %c0_i32_1 = arith.constant 0 : i32
    return %c0_i32, %c0_i32_0 : i32, i32
  }
  func.func @transform_5(%arg0: i32) -> (i32, i32) {
    %c0_i32 = arith.constant 0 : i32
    %c0_i32_0 = arith.constant 0 : i32
    %c0_i32_1 = arith.constant 0 : i32
    return %c0_i32, %c0_i32_0 : i32, i32
  }
  func.func @transform_6(%arg0: i32) -> (i32, i32) {
    %c0_i32 = arith.constant 0 : i32
    %c0_i32_0 = arith.constant 0 : i32
    %c0_i32_1 = arith.constant 0 : i32
    return %c0_i32, %c0_i32_0 : i32, i32
  }
  func.func @transform_7(%arg0: i32) -> (i32, i32) {
    %c0_i32 = arith.constant 0 : i32
    %c0_i32_0 = arith.constant 0 : i32
    %c0_i32_1 = arith.constant 0 : i32
    return %c0_i32, %c0_i32_0 : i32, i32
  }
  func.func @transform_8(%arg0: i32) -> (i32, i32) {
    %c0_i32 = arith.constant 0 : i32
    %c0_i32_0 = arith.constant 0 : i32
    return %arg0, %c0_i32 : i32, i32
  }
  func.func @transform_9(%arg0: i32) -> (i32, i32) {
    %c0_i32 = arith.constant 0 : i32
    %c0_i32_0 = arith.constant 0 : i32
    return %arg0, %c0_i32 : i32, i32
  }
}

</mosaic_0001>

<bundles_post_ra>
// kernel: rnn_classifier_forward.1
= control target key start
LH: loop header
LB: loop body
LE: loop exit
PB: predicated region body
PF: predicated region fallthrough
CT: control target
= control target key end

     0   :  { %15 = vsyncpa [#allocation4], 0  ;;  %s3670_s0 = inlined_call_operand.vmem [shape: bf16[2,64,32], index: 0, kind: input, shape index: {}]   ;;  %s3671_s1 = inlined_call_operand.vmem [shape: bf16[32,512], index: 1, kind: input, shape index: {}]   ;;  %s3672_s2 = inlined_call_operand.vmem [shape: bf16[128,512], index: 2, kind: input, shape index: {}]   ;;  %s3673_s3 = inlined_call_operand.vmem [shape: f32[1,512], index: 3, kind: input, shape index: {}]   ;;  %s3674_s4 = inlined_call_operand.hbm [shape: bf16[128,256], index: 4, kind: input, shape index: {}]   ;;  %s3675_s5 = inlined_call_operand.vmem [shape: f32[1,256], index: 5, kind: input, shape index: {}]   ;;  %s3676_s6 = inlined_call_operand.hbm [shape: bf16[256,128], index: 6, kind: input, shape index: {}]   ;;  %s3677_s7 = inlined_call_operand.vmem [shape: f32[1,128], index: 7, kind: input, shape index: {}]   ;;  %s3678_s8 = inlined_call_operand.vmem [shape: f32[16,128], index: 8, kind: output, shape index: {0}]   ;;  %s3679_s9 = inlined_call_operand.vmem [shape: f32[16,128], index: 9, kind: output, shape index: {1}]  }
   0x1   :  { %16 = vsyncpa [#allocation6], 0  ;;  %s2793_s30 = smov 0  }
   0x2 LB: > { %s2736_s10 = smov [#allocation3]   ;;  %s2799_s12 = sadd.s32 4294967295, %s2734_s30   ;;  %s2734_s30 = sphi %s2793_s30, %s22_s30  }
   0x3   : > { %s273_s11 = sshll.u32 %s2736_s10, 4  ;;  %p2221_p0 = scmp.ge.s32.totalorder %s2734_s30, 1  ;;  %s274_s11 = int_to_ptr.vmem [resolvable:$true] %s273_s11 }
   0x4   : > { %p252_p1 = scmp.lt.s32.totalorder %s2734_s30, 3  ;;  %p2381_p3 = scmp.eq.s32.totalorder %s2799_s12, 0 }
   0x5   : > { %s2737_s14 = smov [#allocation5]   ;;  %s2679_s17 = scalar_lea.vmem %s274_s11, 2048 }
   0x6   : > { %p2803_p2 = pnand %p2221_p0, %p252_p1  ;;  %s289_s15 = sshll.u32 %s2737_s14, 4  ;;  %s290_s15 = int_to_ptr.vmem [resolvable:$true] %s289_s15 }
   0x7   : > { %p2680_p7 = scmp.ne.s32.totalorder %s274_s11, %s2679_s17  ;;  %p2687_p10 = scmp.lt.s32.totalorder %s274_s11, %s274_s11 }
   0x8   : > { %p2374_p4 = pneg %p2803_p2  ;;  %p2688_p11 = scmp.lt.s32.totalorder %s2679_s17, %s2679_s17 }
   0xa   : > { %p2812_p5 = pnand %p2381_p3, %p2374_p4  ;;  %p2689_p12 = por %p2688_p11, %p2687_p10 }
   0xc   : > { %p2670_p6 = pneg %p2812_p5 }
   0xe   : > { %p2682_p8 = pnand %p2680_p7, %p2670_p6 }
  0x10   : > { %p2683_p9 = pneg %p2682_p8 }
  0x12   : > { %p2690_p13 = pnand %p2689_p12, %p2683_p9 }
  0x14   : > { %2693 = shalt.err (!%p2690_p13)
}
  0x15   : > { %s2738_s18 = smov 128   ;;  %s2739_s19 = smov 8  }
  0x16   : > { %2377 = dma.hbm_to_vmem [thread:$0]  (!%p2812_p5), %s3674_s4, 2048, %s274_s11, [#allocation4], %s2738_s18, %s2738_s18, %s2739_s19  }
  0x17   : > { %s2705_s22 = scalar_lea.vmem %s290_s15, 2048  ;;  %p2713_p7 = scmp.lt.s32.totalorder %s290_s15, %s290_s15 }
  0x18   : > { %p2706_p0 = scmp.ne.s32.totalorder %s290_s15, %s2705_s22  ;;  %p2714_p8 = scmp.lt.s32.totalorder %s2705_s22, %s2705_s22 }
  0x1a   : > { %p2708_p1 = pnand %p2706_p0, %p2670_p6  ;;  %p2715_p10 = por %p2714_p8, %p2713_p7 }
  0x1c   : > { %p2709_p4 = pneg %p2708_p1 }
  0x1e   : > { %p2716_p9 = pnand %p2715_p10, %p2709_p4 }
  0x20   : > { %2719 = shalt.err (!%p2716_p9)
}
  0x21   : > { %s2740_s23 = smov 64   ;;  %s2741_s24 = smov 4  }
  0x22   : > { %2380 = dma.hbm_to_vmem [thread:$0]  (!%p2812_p5), %s3676_s6, 2048, %s290_s15, [#allocation6], %s2740_s23, %s2740_s23, %s2741_s24  }
  0x23   : > { %316 = sbr.rel (%p2803_p2) target bundleno = 2805 (0xaf5), region = 52 }
  0x28   : > { %2725 = dma.done.wait (%p2381_p3), [#allocation4], 2048  }
  0x29   : > { %2727 = vsyncadd (%p2381_p3), [#allocation4], 4294965248 }
  0x2a   : > { %2729 = dma.done.wait (%p2381_p3), [#allocation6], 2048  }
  0x2b   : > { %2731 = vsyncadd (%p2381_p3), [#allocation6], 4294965248  ;;  %p359_p6 = scmp.lt.s32.totalorder %s2799_s12, 1  ;;  %v3682_v0 = vmov 0   ;;  %v2400_v1 = vld [vmem:[%s3671_s1 + $0x24] ss:$16 sps:$4 sm:$0xff]   ;;  %v391_v45 = vlaneseq }
  0x2c   : > { %516 = vmatprep.mubr.bf16.mxu0 %v3682_v0  ;;  %589 = vmatprep.mubr.bf16.mxu1 %v3682_v0  ;;  %v2402_v2 = vld [vmem:[%s3671_s1 + $0x2c] ss:$16 sps:$4 sm:$0xff]   ;;  %v2404_v3 = vld [vmem:[%s3671_s1 + $0x20] ss:$16 sps:$4 sm:$0xff]   ;;  %v2405_v4 = vld [vmem:[%s3671_s1 + $0x28] ss:$16 sps:$4 sm:$0xff]  }
  0x2d   : > { %s3732_s12 = smov (!%p359_p6, %s2799_s12), 1  ;;  %496 = vmatprep.subr.bf16.mxu0 %v2400_v1  ;;  %569 = vmatprep.subr.bf16.mxu1 %v2402_v2  ;;  %v2406_v5 = vld [vmem:[%s3671_s1 + $0x4] ss:$16 sps:$4 sm:$0xff]   ;;  %v2408_v6 = vld [vmem:[%s3671_s1 + $0xc] ss:$16 sps:$4 sm:$0xff]   ;;  %vm471_vm0 = vcmask 261120  }
  0x2e   : > { %s2343_s29 = sshll.u32 %s3732_s12, 5  ;;  %497 = vmatpush1.bf16.msra.mxu0 %v2404_v3  ;;  %570 = vmatpush1.bf16.msra.mxu1 %v2405_v4  ;;  %v2410_v7 = vld [vmem:[%s3671_s1] ss:$16 sps:$4 sm:$0xff]   ;;  %v2411_v8 = vld [vmem:[%s3671_s1 + $0x8] ss:$16 sps:$4 sm:$0xff]   ;;  %v3130_v46 = vshrl.u32 %v391_v45, 7 }
  0x2f   : > { %s2869_s21 = scalar_lea.vmem %s3670_s0, %s2343_s29  ;;  %498 = vmatprep.subr.bf16.mxu0 %v2406_v5  ;;  %571 = vmatprep.subr.bf16.mxu1 %v2408_v6  ;;  %v2884_v10 = vld [vmem:[%s3672_s2 + $0xe4] ss:$16 sps:$4 sm:$0xff]   ;;  %v2889_v11 = vld [vmem:[%s3672_s2 + $0xec] ss:$16 sps:$4 sm:$0xff]   ;;  %v2894_v12 = vld [vmem:[%s3672_s2 + $0xe0] ss:$16 sps:$4 sm:$0xff]  }
  0x30   : > { %v2412_v9 = vld [vmem:[%s2869_s21] sm:$0xff]   ;;  %v2899_v13 = vld [vmem:[%s3672_s2 + $0xe8] ss:$16 sps:$4 sm:$0xff]   ;;  %v2911_v15 = vld [vmem:[%s3672_s2 + $0xcc] ss:$16 sps:$4 sm:$0xff]   ;;  %3688 = vst [vmem:[#allocation9_spill] sm:$0xff] %v3130_v46 }
  0x31   : > { %v2905_v14 = vld [vmem:[%s3672_s2 + $0xc4] ss:$16 sps:$4 sm:$0xff]   ;;  %v2918_v16 = vld [vmem:[%s3672_s2 + $0xc0] ss:$16 sps:$4 sm:$0xff]   ;;  %v2925_v17 = vld [vmem:[%s3672_s2 + $0xc8] ss:$16 sps:$4 sm:$0xff]  }
  0x32   : > { %499 = vmatpush1.bf16.msra.mxu0 %v2410_v7  ;;  %572 = vmatpush1.bf16.msra.mxu1 %v2411_v8  ;;  %v2932_v18 = vld [vmem:[%s3672_s2 + $0xa4] ss:$16 sps:$4 sm:$0xff]   ;;  %v2425_v19 = vld [vmem:[%s2869_s21 + $0x8] sm:$0xff]   ;;  %v2945_v21 = vld [vmem:[%s3672_s2 + $0xa0] ss:$16 sps:$4 sm:$0xff]   ;;  %v401_v47 = vsub.s32 2, %v3130_v46 }
  0x33   : > { %858 = vmatprep.subr.bf16.mxu0 %v2884_v10  ;;  %899 = vmatprep.subr.bf16.mxu1 %v2889_v11  ;;  %v2940_v20 = vld [vmem:[%s3672_s2 + $0xac] ss:$16 sps:$4 sm:$0xff]   ;;  %v2952_v22 = vld [vmem:[%s3672_s2 + $0xa8] ss:$16 sps:$4 sm:$0xff]   ;;  %v2959_v23 = vld [vmem:[%s3672_s2 + $0x84] ss:$16 sps:$4 sm:$0xff]  }
  0x34   : > { %v2964_v24 = vld [vmem:[%s3672_s2 + $0x8c] ss:$16 sps:$4 sm:$0xff]   ;;  %v2971_v25 = vld [vmem:[%s3672_s2 + $0x80] ss:$16 sps:$4 sm:$0xff]   ;;  %v2978_v26 = vld [vmem:[%s3672_s2 + $0x88] ss:$16 sps:$4 sm:$0xff]  }
  0x35   : > { %2244 = vmatmul.mubr.msk.bf16.vlgmr.msra.gmra.mxu0 %vm471_vm0, %v2412_v9  ;;  %2248 = vmatmul.mubr.msk.bf16.vlgmr.msra.gmra.mxu1 %vm471_vm0, %v2412_v9  ;;  %v2985_v27 = vld [vmem:[%s3672_s2 + $0x64] ss:$16 sps:$4 sm:$0xff]   ;;  %v2990_v28 = vld [vmem:[%s3672_s2 + $0x6c] ss:$16 sps:$4 sm:$0xff]   ;;  %v2998_v30 = vld [vmem:[%s3672_s2 + $0x60] ss:$16 sps:$4 sm:$0xff]  }
  0x36   : > { %859 = vmatpush1.bf16.msra.mxu0 %v2894_v12  ;;  %900 = vmatpush1.bf16.msra.mxu1 %v2899_v13  ;;  %v2438_v29 = vld [vmem:[%s2869_s21 + $0x10] sm:$0xff]   ;;  %v3003_v31 = vld [vmem:[%s3672_s2 + $0x68] ss:$16 sps:$4 sm:$0xff]   ;;  %v3017_v33 = vld [vmem:[%s3672_s2 + $0x4c] ss:$16 sps:$4 sm:$0xff]   ;;  %v3681_v48 = vsub.s32 0, %v3130_v46 }
  0x37   : > { %860 = vmatprep.subr.bf16.mxu0 %v2905_v14  ;;  %901 = vmatprep.subr.bf16.mxu1 %v2911_v15  ;;  %v3010_v32 = vld [vmem:[%s3672_s2 + $0x44] ss:$16 sps:$4 sm:$0xff]   ;;  %v3024_v34 = vld [vmem:[%s3672_s2 + $0x40] ss:$16 sps:$4 sm:$0xff]   ;;  %v3029_v35 = vld [vmem:[%s3672_s2 + $0x48] ss:$16 sps:$4 sm:$0xff]  }
  0x38   : > { %526 = vmatprep.mubr.bf16.mxu0 %v3682_v0  ;;  %599 = vmatprep.mubr.bf16.mxu1 %v3682_v0  ;;  %v3036_v36 = vld [vmem:[%s3672_s2 + $0x24] ss:$16 sps:$4 sm:$0xff]   ;;  %v3043_v37 = vld [vmem:[%s3672_s2 + $0x2c] ss:$16 sps:$4 sm:$0xff]   ;;  %v3051_v39 = vld [vmem:[%s3672_s2 + $0x20] ss:$16 sps:$4 sm:$0xff]  }
  0x39   : > { %v2451_v38 = vld [vmem:[%s2869_s21 + $0x18] sm:$0xff]   ;;  %v3061_v41 = vld [vmem:[%s3672_s2 + $0x4] ss:$16 sps:$4 sm:$0xff]   ;;  %v3075_v43 = vld [vmem:[%s3672_s2] ss:$16 sps:$4 sm:$0xff]   ;;  %v405_v49 = vsub.s32 3, %v3130_v46 }
  0x3a   : > { %861 = vmatpush1.bf16.msra.mxu0 %v2918_v16  ;;  %902 = vmatpush1.bf16.msra.mxu1 %v2925_v17  ;;  %v3056_v40 = vld [vmem:[%s3672_s2 + $0x28] ss:$16 sps:$4 sm:$0xff]   ;;  %v3066_v42 = vld [vmem:[%s3672_s2 + $0xc] ss:$16 sps:$4 sm:$0xff]   ;;  %v389_v50 = vld [vmem:[%s3673_s3] sm:$0xf] }
  0x3b   : > { %862 = vmatprep.subr.bf16.mxu0 %v2932_v18  ;;  %903 = vmatprep.subr.bf16.mxu1 %v2940_v20  ;;  %v3080_v44 = vld [vmem:[%s3672_s2 + $0x8] ss:$16 sps:$4 sm:$0xff]   ;;  %v3142_v53 = vrot.slane %v389_v50, %v401_v47  ;;  %v3680_v54 = vsub.s32 1, %v3130_v46  ;;  %v394_v57 = vrot.slane %v389_v50, %v3681_v48  ;;  %v3151_v58 = vrot.slane %v389_v50, %v405_v49  ;;  %s2230_s10 = sshll.u32 %s3732_s12, 3 }
  0x3c   : > { %s367_s15 = scalar_lea.vmem %s3678_s8, %s2230_s10  ;;  %s371_s17 = scalar_lea.vmem %s3679_s9, %s2230_s10 }
  0x3d   : > { %2245 = vmatmul.mubr.msk.bf16.gmra.mxu0 %vm471_vm0, %v2425_v19  ;;  %2249 = vmatmul.mubr.msk.bf16.gmra.mxu1 %vm471_vm0, %v2425_v19  ;;  %v398_v61 = vrot.slane %v389_v50, %v3680_v54 }
  0x3e   : > { %863 = vmatpush1.bf16.msra.mxu0 %v2945_v21  ;;  %904 = vmatpush1.bf16.msra.mxu1 %v2952_v22 }
  0x3f   : > { %864 = vmatprep.subr.bf16.mxu0 %v2959_v23  ;;  %905 = vmatprep.subr.bf16.mxu1 %v2964_v24 }
  0x40   : > { %536 = vmatprep.mubr.bf16.mxu0 %v3682_v0  ;;  %609 = vmatprep.mubr.bf16.mxu1 %v3682_v0 }
  0x42   : > { %865 = vmatpush1.bf16.msra.mxu0 %v2971_v25  ;;  %906 = vmatpush1.bf16.msra.mxu1 %v2978_v26 }
  0x43   : > { %866 = vmatprep.subr.bf16.mxu0 %v2985_v27  ;;  %907 = vmatprep.subr.bf16.mxu1 %v2990_v28 }
  0x45   : > { %2246 = vmatmul.mubr.msk.bf16.gmra.mxu0 %vm471_vm0, %v2438_v29  ;;  %2250 = vmatmul.mubr.msk.bf16.gmra.mxu1 %vm471_vm0, %v2438_v29 }
  0x46   : > { %867 = vmatpush1.bf16.msra.mxu0 %v2998_v30  ;;  %908 = vmatpush1.bf16.msra.mxu1 %v3003_v31 }
  0x47   : > { %868 = vmatprep.subr.bf16.mxu0 %v3010_v32  ;;  %909 = vmatprep.subr.bf16.mxu1 %v3017_v33 }
  0x48   : > { %546 = vmatprep.mubr.bf16.mxu0 %v3682_v0  ;;  %619 = vmatprep.mubr.bf16.mxu1 %v3682_v0 }
  0x4a   : > { %869 = vmatpush1.bf16.msra.mxu0 %v3024_v34  ;;  %910 = vmatpush1.bf16.msra.mxu1 %v3029_v35 }
  0x4b   : > { %870 = vmatprep.subr.bf16.mxu0 %v3036_v36  ;;  %911 = vmatprep.subr.bf16.mxu1 %v3043_v37 }
  0x4d   : > { %2247 = vmatmul.mubr.msk.bf16.gmra.mxu0 %vm471_vm0, %v2451_v38  ;;  %2251 = vmatmul.mubr.msk.bf16.gmra.mxu1 %vm471_vm0, %v2451_v38 }
  0x4e   : > { %871 = vmatpush1.bf16.msra.mxu0 %v3051_v39  ;;  %912 = vmatpush1.bf16.msra.mxu1 %v3056_v40 }
  0x4f   : > { %872 = vmatprep.subr.bf16.mxu0 %v3061_v41  ;;  %913 = vmatprep.subr.bf16.mxu1 %v3066_v42 }
  0x50   : > { %890 = vmatprep.mubr.bf16.mxu0 %v3682_v0  ;;  %931 = vmatprep.mubr.bf16.mxu1 %v3682_v0 }
  0x52   : > { %873 = vmatpush1.bf16.msra.mxu0 %v3075_v43  ;;  %914 = vmatpush1.bf16.msra.mxu1 %v3080_v44 }
  0x53   : > { %973 = vmatprep.subr.bf16.mxu0 %v2884_v10  ;;  %1014 = vmatprep.subr.bf16.mxu1 %v2889_v11 }
  0x55   : > { %891 = vmatmul.mubr.bf16.vlgmr.msra.gmra.mxu0 %v3682_v0  ;;  %932 = vmatmul.mubr.bf16.vlgmr.msra.gmra.mxu1 %v3682_v0 }
  0x56   : > { %974 = vmatpush1.bf16.msra.mxu0 %v2894_v12  ;;  %1015 = vmatpush1.bf16.msra.mxu1 %v2899_v13 }
  0x57   : > { %975 = vmatprep.subr.bf16.mxu0 %v2905_v14  ;;  %1016 = vmatprep.subr.bf16.mxu1 %v2911_v15 }
  0x58   : > { %1005 = vmatprep.mubr.bf16.mxu0 %v3682_v0  ;;  %1046 = vmatprep.mubr.bf16.mxu1 %v3682_v0 }
  0x5a   : > { %976 = vmatpush1.bf16.msra.mxu0 %v2918_v16  ;;  %1017 = vmatpush1.bf16.msra.mxu1 %v2925_v17 }
  0x5b   : > { %977 = vmatprep.subr.bf16.mxu0 %v2932_v18  ;;  %1018 = vmatprep.subr.bf16.mxu1 %v2940_v20 }
  0x5e   : > { %978 = vmatpush1.bf16.msra.mxu0 %v2945_v21  ;;  %1019 = vmatpush1.bf16.msra.mxu1 %v2952_v22 }
  0x5f   : > { %979 = vmatprep.subr.bf16.mxu0 %v2959_v23  ;;  %1020 = vmatprep.subr.bf16.mxu1 %v2964_v24 }
  0x62   : > { %980 = vmatpush1.bf16.msra.mxu0 %v2971_v25  ;;  %1021 = vmatpush1.bf16.msra.mxu1 %v2978_v26 }
  0x63   : > { %981 = vmatprep.subr.bf16.mxu0 %v2985_v27  ;;  %1022 = vmatprep.subr.bf16.mxu1 %v2990_v28 }
  0x66   : > { %982 = vmatpush1.bf16.msra.mxu0 %v2998_v30  ;;  %1023 = vmatpush1.bf16.msra.mxu1 %v3003_v31 }
  0x67   : > { %983 = vmatprep.subr.bf16.mxu0 %v3010_v32  ;;  %1024 = vmatprep.subr.bf16.mxu1 %v3017_v33 }
  0x6a   : > { %984 = vmatpush1.bf16.msra.mxu0 %v3024_v34  ;;  %1025 = vmatpush1.bf16.msra.mxu1 %v3029_v35 }
  0x6b   : > { %985 = vmatprep.subr.bf16.mxu0 %v3036_v36  ;;  %1026 = vmatprep.subr.bf16.mxu1 %v3043_v37 }
  0x6e   : > { %986 = vmatpush1.bf16.msra.mxu0 %v3051_v39  ;;  %1027 = vmatpush1.bf16.msra.mxu1 %v3056_v40 }
  0x6f   : > { %987 = vmatprep.subr.bf16.mxu0 %v3061_v41  ;;  %1028 = vmatprep.subr.bf16.mxu1 %v3066_v42 }
  0x72   : > { %988 = vmatpush1.bf16.msra.mxu0 %v3075_v43  ;;  %1029 = vmatpush1.bf16.msra.mxu1 %v3080_v44 }
  0x73   : > { %1088 = vmatprep.subr.bf16.mxu0 %v2884_v10  ;;  %1129 = vmatprep.subr.bf16.mxu1 %v2889_v11 }
  0xf5   : > { %v3138_v51 = vpop.f32.mrf.mxu0  ;;  %v3140_v52 = vpop.f32.mrf.mxu1 }
  0xf7   : > { %v3145_v55 = vpop.f32.mrf.mxu0  ;;  %v3147_v56 = vpop.f32.mrf.mxu1 }
  0xf9   : > { %v522_v59 = vpop.f32.mrf.mxu0  ;;  %v595_v60 = vpop.f32.mrf.mxu1 }
  0xfa   : > { %v3155_v62 = vadd.f32 %v522_v59, %v394_v57  ;;  %v3158_v63 = vadd.f32 %v595_v60, %v3142_v53 }
  0xfb   : > { %v524_v1 = vpop.f32.mrf.mxu0  ;;  %v597_v2 = vpop.f32.mrf.mxu1 }
  0xfc   : > { %v3160_v3 = vadd.f32 %v524_v1, %v398_v61  ;;  %v3163_v4 = vadd.f32 %v597_v2, %v3151_v58 }
  0xfd   : > { %v528_v5 = vpop.f32.mrf.mxu0  ;;  %v601_v6 = vpop.f32.mrf.mxu1 }
  0xfe   : > { %v3165_v7 = vadd.f32 %v528_v5, %v394_v57  ;;  %v3168_v8 = vadd.f32 %v601_v6, %v3142_v53 }
  0xff   : > { %v530_v9 = vpop.f32.mrf.mxu0  ;;  %v603_v19 = vpop.f32.mrf.mxu1 }
 0x100   : > { %3689 = vst [vmem:[#allocation10_spill] sm:$0xff] %v3168_v8  ;;  %v3170_v29 = vadd.f32 %v530_v9, %v398_v61  ;;  %v3173_v38 = vadd.f32 %v603_v19, %v3151_v58 }
 0x101   : > { %v532_v45 = vpop.f32.mrf.mxu0  ;;  %v605_v47 = vpop.f32.mrf.mxu1 }
 0x102   : > { %v3175_v49 = vadd.f32 %v532_v45, %v394_v57  ;;  %v3178_v50 = vadd.f32 %v605_v47, %v3142_v53 }
 0x103   : > { %v534_v59 = vpop.f32.mrf.mxu0  ;;  %v607_v60 = vpop.f32.mrf.mxu1 }
 0x104   : > { %3690 = vst [vmem:[#allocation11_spill] sm:$0xff] %v3175_v49  ;;  %3691 = vst [vmem:[#allocation12_spill] sm:$0xff] %v3178_v50  ;;  %v3180_v1 = vadd.f32 %v534_v59, %v398_v61  ;;  %v3183_v2 = vadd.f32 %v607_v60, %v3151_v58 }
 0x105   : > { %v538_v5 = vpop.f32.mrf.mxu0  ;;  %v611_v6 = vpop.f32.mrf.mxu1 }
 0x106   : > { %3692 = vst [vmem:[#allocation13_spill] sm:$0xff] %v3180_v1  ;;  %3693 = vst [vmem:[#allocation14_spill] sm:$0xff] %v3183_v2  ;;  %v3185_v9 = vadd.f32 %v538_v5, %v394_v57  ;;  %v3188_v19 = vadd.f32 %v611_v6, %v3142_v53 }
 0x107   : > { %v540_v54 = vpop.f32.mrf.mxu0  ;;  %v613_v45 = vpop.f32.mrf.mxu1 }
 0x108   : > { %3694 = vst [vmem:[#allocation15_spill] sm:$0xff] %v3185_v9  ;;  %3695 = vst [vmem:[#allocation16_spill] sm:$0xff] %v3188_v19  ;;  %v3190_v48 = vadd.f32 %v540_v54, %v398_v61  ;;  %v3193_v47 = vadd.f32 %v613_v45, %v3151_v58 }
 0x109   : > { %v542_v0 = vpop.f32.mrf.mxu0  ;;  %v615_v59 = vpop.f32.mrf.mxu1 }
 0x10a   : > { %3696 = vst [vmem:[#allocation17_spill] sm:$0xff] %v3190_v48  ;;  %3697 = vst [vmem:[#allocation18_spill] sm:$0xff] %v3193_v47  ;;  %v3195_v46 = vadd.f32 %v542_v0, %v394_v57  ;;  %v3198_v60 = vadd.f32 %v615_v59, %v3142_v53 }
 0x10b   : > { %v544_v50 = vpop.f32.mrf.mxu0  ;;  %v617_v5 = vpop.f32.mrf.mxu1 }
 0x10c   : > { %3698 = vst [vmem:[#allocation19_spill] sm:$0xff] %v3195_v46  ;;  %3699 = vst [vmem:[#allocation20_spill] sm:$0xff] %v3198_v60  ;;  %v3200_v9 = vadd.f32 %v544_v50, %v398_v61  ;;  %v3203_v6 = vadd.f32 %v617_v5, %v3151_v58 }
 0x10d   : > { %v548_v19 = vpop.f32.mrf.mxu0  ;;  %v621_v54 = vpop.f32.mrf.mxu1 }
 0x10e   : > { %3700 = vst [vmem:[#allocation21_spill] sm:$0xff] %v3200_v9  ;;  %3701 = vst [vmem:[#allocation22_spill] sm:$0xff] %v3203_v6  ;;  %v3205_v48 = vadd.f32 %v548_v19, %v394_v57  ;;  %v3208_v45 = vadd.f32 %v621_v54, %v3142_v53 }
 0x10f   : > { %v550_v47 = vpop.f32.mrf.mxu0  ;;  %v623_v0 = vpop.f32.mrf.mxu1 }
 0x110   : > { %3702 = vst [vmem:[#allocation23_spill] sm:$0xff] %v3205_v48  ;;  %3703 = vst [vmem:[#allocation24_spill] sm:$0xff] %v3208_v45  ;;  %v3210_v46 = vadd.f32 %v550_v47, %v398_v61  ;;  %v3213_v59 = vadd.f32 %v623_v0, %v3151_v58  ;;  %v519_v48 = vadd.f32 %v3138_v51, %v394_v57 }
 0x111   : > { %v552_v60 = vpop.f32.mrf.mxu0  ;;  %v625_v50 = vpop.f32.mrf.mxu1  ;;  %v521_v0 = vadd.f32 %v3145_v55, %v398_v61 }
 0x112   : > { %3704 = vst [vmem:[#allocation25_spill] sm:$0xff] %v3210_v46  ;;  %3705 = vst [vmem:[#allocation26_spill] sm:$0xff] %v3213_v59  ;;  %v3215_v9 = vadd.f32 %v552_v60, %v394_v57  ;;  %v3218_v5 = vadd.f32 %v625_v50, %v3142_v53  ;;  %v594_v57 = vadd.f32 %v3147_v56, %v3151_v58 }
 0x113   : > { %v554_v6 = vpop.f32.mrf.mxu0  ;;  %v627_v19 = vpop.f32.mrf.mxu1 }
 0x114   : > { %3706 = vst [vmem:[#allocation27_spill] sm:$0xff] %v3215_v9  ;;  %3707 = vst [vmem:[#allocation28_spill] sm:$0xff] %v3218_v5  ;;  %v3221_v54 = vadd.f32 %v554_v6, %v398_v61  ;;  %v3224_v45 = vadd.f32 %v627_v19, %v3151_v58  ;;  %v592_v19 = vadd.f32 %v3140_v52, %v3142_v53 }
 0x115   : > { %v892_v47 = vpop.f32.mrf.mxu0  ;;  %v933_v46 = vpop.f32.mrf.mxu1 }
 0x116   : > { %v940_v59 = vadd.f32 %v892_v47, %v519_v48  ;;  %v942_v61 = vadd.f32 %v933_v46, %v592_v19 }
 0x117   : > { %v894_v2 = vpop.f32.mrf.mxu0  ;;  %v935_v60 = vpop.f32.mrf.mxu1 }
 0x118   : > { %v2284_v9 = vmul.f32 -1.442695, %v940_v59  ;;  %v941_v1 = vadd.f32 %v894_v2, %v521_v0  ;;  %v943_v6 = vadd.f32 %v935_v60, %v594_v57 }
 0x119   : > { %v896_v50 = vpop.f32.mrf.mxu0  ;;  %v937_v5 = vpop.f32.mrf.mxu1 }
 0x11a   : > { %2504 = vpow2.f32 %v2284_v9  ;;  %v2285_v49 = vmul.f32 -1.442695, %v941_v1  ;;  %v2286_v55 = vmul.f32 -1.442695, %v943_v6  ;;  %v3708_v50 = vmov 0  }
 0x11b   : > { %v897_v8 = vpop.f32.mrf.mxu0  ;;  %v938_v51 = vpop.f32.mrf.mxu1 }
 0x11c   : > { %2506 = vpow2.f32 %v2285_v49 }
 0x11d   : > { %2508 = vpow2.f32 %v2286_v55 }
 0x127   : > { %v2505_v48 = vpop.eup %2504 }
 0x128   : > { %v947_v47 = vadd.f32 1.0, %v2505_v48 }
 0x129   : > { %v2507_v59 = vpop.eup %2506 }
 0x12a   : > { %2510 = vrcp.f32 %v947_v47  ;;  %v953_v2 = vadd.f32 1.0, %v2507_v59  ;;  %v2509_v8 = vpop.eup %2508 }
 0x12b   : > { %2512 = vtanh.f32 %v942_v61  ;;  %v960_v5 = vadd.f32 1.0, %v2509_v8 }
 0x12c   : > { %2514 = vrcp.f32 %v953_v2 }
 0x12d   : > { %2516 = vrcp.f32 %v960_v5 }
 0x137   : > { %v2511_v1 = vpop.eup %2510 }
 0x138   : > { %v2513_v49 = vpop.eup %2512 }
 0x139   : > { %v2515_v9 = vpop.eup %2514  ;;  %v964_v58 = vmul.f32 %v2513_v49, %v2511_v1 }
 0x13a   : > { %v963_v56 = vmul.f32 0.0, %v2515_v9  ;;  %v2517_v46 = vpop.eup %2516 }
 0x13c   : > { %v3231_v0 = vadd.f32 %v964_v58, %v963_v56 }
 0x13e   : > { %2518 = vtanh.f32 %v3231_v0 }
 0x14b   : > { %v2519_v52 = vpop.eup %2518 }
 0x14c   : > { %v967_v53 = vmul.f32 %v2519_v52, %v2517_v46 }
 0x14e   : > { %v972_v60 = vpack.c.bf16 %v967_v53, %v967_v53 }
 0x150   : > { %1006 = vmatmul.mubr.bf16.vlgmr.msra.gmra.mxu0 %v972_v60  ;;  %1047 = vmatmul.mubr.bf16.vlgmr.msra.gmra.mxu1 %v972_v60 }
 0x151   : > { %1089 = vmatpush1.bf16.msra.mxu0 %v2894_v12  ;;  %1130 = vmatpush1.bf16.msra.mxu1 %v2899_v13 }
 0x152   : > { %1090 = vmatprep.subr.bf16.mxu0 %v2905_v14  ;;  %1131 = vmatprep.subr.bf16.mxu1 %v2911_v15 }
 0x153   : > { %1120 = vmatprep.mubr.bf16.mxu0 %v3708_v50  ;;  %1161 = vmatprep.mubr.bf16.mxu1 %v3708_v50 }
 0x155   : > { %1091 = vmatpush1.bf16.msra.mxu0 %v2918_v16  ;;  %1132 = vmatpush1.bf16.msra.mxu1 %v2925_v17 }
 0x156   : > { %1092 = vmatprep.subr.bf16.mxu0 %v2932_v18  ;;  %1133 = vmatprep.subr.bf16.mxu1 %v2940_v20 }
 0x159   : > { %1093 = vmatpush1.bf16.msra.mxu0 %v2945_v21  ;;  %1134 = vmatpush1.bf16.msra.mxu1 %v2952_v22 }
 0x15a   : > { %1094 = vmatprep.subr.bf16.mxu0 %v2959_v23  ;;  %1135 = vmatprep.subr.bf16.mxu1 %v2964_v24 }
 0x15d   : > { %1095 = vmatpush1.bf16.msra.mxu0 %v2971_v25  ;;  %1136 = vmatpush1.bf16.msra.mxu1 %v2978_v26 }
 0x15e   : > { %1096 = vmatprep.subr.bf16.mxu0 %v2985_v27  ;;  %1137 = vmatprep.subr.bf16.mxu1 %v2990_v28 }
 0x161   : > { %1097 = vmatpush1.bf16.msra.mxu0 %v2998_v30  ;;  %1138 = vmatpush1.bf16.msra.mxu1 %v3003_v31 }
 0x162   : > { %1098 = vmatprep.subr.bf16.mxu0 %v3010_v32  ;;  %1139 = vmatprep.subr.bf16.mxu1 %v3017_v33 }
 0x165   : > { %1099 = vmatpush1.bf16.msra.mxu0 %v3024_v34  ;;  %1140 = vmatpush1.bf16.msra.mxu1 %v3029_v35 }
 0x166   : > { %1100 = vmatprep.subr.bf16.mxu0 %v3036_v36  ;;  %1141 = vmatprep.subr.bf16.mxu1 %v3043_v37 }
 0x169   : > { %1101 = vmatpush1.bf16.msra.mxu0 %v3051_v39  ;;  %1142 = vmatpush1.bf16.msra.mxu1 %v3056_v40 }
 0x16a   : > { %1102 = vmatprep.subr.bf16.mxu0 %v3061_v41  ;;  %1143 = vmatprep.subr.bf16.mxu1 %v3066_v42 }
 0x16d   : > { %1103 = vmatpush1.bf16.msra.mxu0 %v3075_v43  ;;  %1144 = vmatpush1.bf16.msra.mxu1 %v3080_v44 }
 0x16e   : > { %1203 = vmatprep.subr.bf16.mxu0 %v2884_v10  ;;  %1244 = vmatprep.subr.bf16.mxu1 %v2889_v11 }
 0x210   : > { %v1007_v51 = vpop.f32.mrf.mxu0  ;;  %v1048_v57 = vpop.f32.mrf.mxu1 }
 0x211   : > { %v1055_v6 = vadd.f32 %v1007_v51, %v3155_v62  ;;  %v1057_v9 = vadd.f32 %v1048_v57, %v3158_v63 }
 0x212   : > { %v1009_v19 = vpop.f32.mrf.mxu0  ;;  %v1050_v55 = vpop.f32.mrf.mxu1 }
 0x213   : > { %v2287_v48 = vmul.f32 -1.442695, %v1055_v6  ;;  %v1056_v61 = vadd.f32 %v1009_v19, %v3160_v3  ;;  %v1058_v49 = vadd.f32 %v1050_v55, %v3163_v4 }
 0x214   : > { %v1011_v47 = vpop.f32.mrf.mxu0  ;;  %v1052_v59 = vpop.f32.mrf.mxu1 }
 0x215   : > { %2520 = vpow2.f32 %v2287_v48  ;;  %v2288_v2 = vmul.f32 -1.442695, %v1056_v61  ;;  %v2289_v5 = vmul.f32 -1.442695, %v1058_v49 }
 0x216   : > { %v1012_v8 = vpop.f32.mrf.mxu0  ;;  %v1053_v1 = vpop.f32.mrf.mxu1 }
 0x217   : > { %2522 = vpow2.f32 %v2288_v2 }
 0x218   : > { %2524 = vtanh.f32 %v1057_v9 }
 0x219   : > { %2526 = vpow2.f32 %v2289_v5 }
 0x222   : > { %v2521_v56 = vpop.eup %2520 }
 0x223   : > { %v1062_v58 = vadd.f32 1.0, %v2521_v56 }
 0x224   : > { %v2523_v62 = vpop.eup %2522 }
 0x225   : > { %2528 = vrcp.f32 %v1062_v58  ;;  %v1068_v46 = vadd.f32 1.0, %v2523_v62  ;;  %v2525_v3 = vpop.eup %2524 }
 0x226   : > { %v2527_v52 = vpop.eup %2526 }
 0x227   : > { %2530 = vrcp.f32 %v1068_v46  ;;  %v1075_v6 = vadd.f32 1.0, %v2527_v52  ;;  %v3709_v46 = vld [vmem:[#allocation10_spill] sm:$0xff] }
 0x229   : > { %2532 = vrcp.f32 %v1075_v6 }
 0x232   : > { %v2529_v53 = vpop.eup %2528 }
 0x233   : > { %v1079_v60 = vmul.f32 %v2529_v53, %v2525_v3 }
 0x234   : > { %v2531_v51 = vpop.eup %2530 }
 0x235   : > { %v1078_v19 = vmul.f32 %v2531_v51, %v3231_v0 }
 0x236   : > { %v2533_v63 = vpop.eup %2532 }
 0x237   : > { %v3273_v4 = vadd.f32 %v1079_v60, %v1078_v19 }
 0x239   : > { %2534 = vtanh.f32 %v3273_v4 }
 0x246   : > { %v2535_v57 = vpop.eup %2534 }
 0x247   : > { %v1082_v55 = vmul.f32 %v2535_v57, %v2533_v63 }
 0x249   : > { %v1087_v48 = vpack.c.bf16 %v1082_v55, %v1082_v55 }
 0x24b   : > { %1121 = vmatmul.mubr.bf16.vlgmr.msra.gmra.mxu0 %v1087_v48  ;;  %1162 = vmatmul.mubr.bf16.vlgmr.msra.gmra.mxu1 %v1087_v48 }
 0x24c   : > { %1204 = vmatpush1.bf16.msra.mxu0 %v2894_v12  ;;  %1245 = vmatpush1.bf16.msra.mxu1 %v2899_v13 }
 0x24d   : > { %1205 = vmatprep.subr.bf16.mxu0 %v2905_v14  ;;  %1246 = vmatprep.subr.bf16.mxu1 %v2911_v15 }
 0x24e   : > { %1235 = vmatprep.mubr.bf16.mxu0 %v3708_v50  ;;  %1276 = vmatprep.mubr.bf16.mxu1 %v3708_v50 }
 0x250   : > { %1206 = vmatpush1.bf16.msra.mxu0 %v2918_v16  ;;  %1247 = vmatpush1.bf16.msra.mxu1 %v2925_v17 }
 0x251   : > { %1207 = vmatprep.subr.bf16.mxu0 %v2932_v18  ;;  %1248 = vmatprep.subr.bf16.mxu1 %v2940_v20 }
 0x254   : > { %1208 = vmatpush1.bf16.msra.mxu0 %v2945_v21  ;;  %1249 = vmatpush1.bf16.msra.mxu1 %v2952_v22 }
 0x255   : > { %1209 = vmatprep.subr.bf16.mxu0 %v2959_v23  ;;  %1250 = vmatprep.subr.bf16.mxu1 %v2964_v24 }
 0x258   : > { %1210 = vmatpush1.bf16.msra.mxu0 %v2971_v25  ;;  %1251 = vmatpush1.bf16.msra.mxu1 %v2978_v26 }
 0x259   : > { %1211 = vmatprep.subr.bf16.mxu0 %v2985_v27  ;;  %1252 = vmatprep.subr.bf16.mxu1 %v2990_v28 }
 0x25c   : > { %1212 = vmatpush1.bf16.msra.mxu0 %v2998_v30  ;;  %1253 = vmatpush1.bf16.msra.mxu1 %v3003_v31 }
 0x25d   : > { %1213 = vmatprep.subr.bf16.mxu0 %v3010_v32  ;;  %1254 = vmatprep.subr.bf16.mxu1 %v3017_v33 }
 0x260   : > { %1214 = vmatpush1.bf16.msra.mxu0 %v3024_v34  ;;  %1255 = vmatpush1.bf16.msra.mxu1 %v3029_v35 }
 0x261   : > { %1215 = vmatprep.subr.bf16.mxu0 %v3036_v36  ;;  %1256 = vmatprep.subr.bf16.mxu1 %v3043_v37 }
 0x264   : > { %1216 = vmatpush1.bf16.msra.mxu0 %v3051_v39  ;;  %1257 = vmatpush1.bf16.msra.mxu1 %v3056_v40 }
 0x265   : > { %1217 = vmatprep.subr.bf16.mxu0 %v3061_v41  ;;  %1258 = vmatprep.subr.bf16.mxu1 %v3066_v42 }
 0x268   : > { %1218 = vmatpush1.bf16.msra.mxu0 %v3075_v43  ;;  %1259 = vmatpush1.bf16.msra.mxu1 %v3080_v44 }
 0x269   : > { %1318 = vmatprep.subr.bf16.mxu0 %v2884_v10  ;;  %1359 = vmatprep.subr.bf16.mxu1 %v2889_v11 }
 0x30b   : > { %v1122_v0 = vpop.f32.mrf.mxu0  ;;  %v1163_v61 = vpop.f32.mrf.mxu1 }
 0x30c   : > { %v1170_v47 = vadd.f32 %v1122_v0, %v3165_v7  ;;  %v1172_v3 = vadd.f32 %v1163_v61, %v3709_v46 }
 0x30d   : > { %v1124_v59 = vpop.f32.mrf.mxu0  ;;  %v1165_v2 = vpop.f32.mrf.mxu1 }
 0x30e   : > { %v2290_v8 = vmul.f32 -1.442695, %v1170_v47  ;;  %v1171_v1 = vadd.f32 %v1124_v59, %v3170_v29  ;;  %v1173_v62 = vadd.f32 %v1165_v2, %v3173_v38 }
 0x30f   : > { %v1126_v49 = vpop.f32.mrf.mxu0  ;;  %v1167_v9 = vpop.f32.mrf.mxu1 }
 0x310   : > { %2536 = vpow2.f32 %v2290_v8  ;;  %v2291_v5 = vmul.f32 -1.442695, %v1171_v1  ;;  %v2292_v52 = vmul.f32 -1.442695, %v1173_v62  ;;  %v3712_v8 = vld [vmem:[#allocation14_spill] sm:$0xff]  ;;  %v3713_v1 = vld [vmem:[#allocation12_spill] sm:$0xff] }
 0x311   : > { %v1127_v56 = vpop.f32.mrf.mxu0  ;;  %v1168_v58 = vpop.f32.mrf.mxu1 }
 0x312   : > { %2538 = vpow2.f32 %v2291_v5 }
 0x313   : > { %2540 = vtanh.f32 %v1172_v3 }
 0x314   : > { %2542 = vpow2.f32 %v2292_v52 }
 0x31d   : > { %v2537_v53 = vpop.eup %2536 }
 0x31e   : > { %v1177_v60 = vadd.f32 1.0, %v2537_v53 }
 0x31f   : > { %v2539_v7 = vpop.eup %2538 }
 0x320   : > { %2544 = vrcp.f32 %v1177_v60  ;;  %v1183_v51 = vadd.f32 1.0, %v2539_v7  ;;  %v2541_v29 = vpop.eup %2540 }
 0x321   : > { %v2543_v6 = vpop.eup %2542 }
 0x322   : > { %2546 = vrcp.f32 %v1183_v51  ;;  %v1190_v55 = vadd.f32 1.0, %v2543_v6 }
 0x324   : > { %2548 = vrcp.f32 %v1190_v55  ;;  %v3369_v55 = vld [vmem:[%s3672_s2 + $0xe8] ss:$16 sps:$4 sm:$0xff]  }
 0x32d   : > { %v2545_v19 = vpop.eup %2544 }
 0x32e   : > { %v1194_v63 = vmul.f32 %v2545_v19, %v2541_v29 }
 0x32f   : > { %v2547_v57 = vpop.eup %2546 }
 0x330   : > { %v1193_v48 = vmul.f32 %v2547_v57, %v3273_v4  ;;  %v3363_v57 = vld [vmem:[%s3672_s2 + $0xe0] ss:$16 sps:$4 sm:$0xff]  }
 0x331   : > { %v2549_v0 = vpop.eup %2548 }
 0x332   : > { %v3315_v38 = vadd.f32 %v1194_v63, %v1193_v48  ;;  %v3375_v48 = vld [vmem:[%s3672_s2 + $0xc4] ss:$16 sps:$4 sm:$0xff]  }
 0x334   : > { %2550 = vtanh.f32 %v3315_v38 }
 0x341   : > { %v2551_v61 = vpop.eup %2550 }
 0x342   : > { %v1197_v47 = vmul.f32 %v2551_v61, %v2549_v0  ;;  %v3389_v0 = vld [vmem:[%s3672_s2 + $0xc0] ss:$16 sps:$4 sm:$0xff]   ;;  %v3395_v61 = vld [vmem:[%s3672_s2 + $0xc8] ss:$16 sps:$4 sm:$0xff]  }
 0x344   : > { %v1202_v59 = vpack.c.bf16 %v1197_v47, %v1197_v47  ;;  %v3401_v47 = vld [vmem:[%s3672_s2 + $0xa4] ss:$16 sps:$4 sm:$0xff]  }
 0x346   : > { %1236 = vmatmul.mubr.bf16.vlgmr.msra.gmra.mxu0 %v1202_v59  ;;  %1277 = vmatmul.mubr.bf16.vlgmr.msra.gmra.mxu1 %v1202_v59  ;;  %v3407_v59 = vld [vmem:[%s3672_s2 + $0xac] ss:$16 sps:$4 sm:$0xff]  }
 0x347   : > { %1319 = vmatpush1.bf16.msra.mxu0 %v2894_v12  ;;  %1360 = vmatpush1.bf16.msra.mxu1 %v2899_v13 }
 0x348   : > { %1320 = vmatprep.subr.bf16.mxu0 %v2905_v14  ;;  %1361 = vmatprep.subr.bf16.mxu1 %v2911_v15  ;;  %v3710_v14 = vld [vmem:[#allocation11_spill] sm:$0xff] }
 0x349   : > { %1350 = vmatprep.mubr.bf16.mxu0 %v3708_v50  ;;  %1391 = vmatprep.mubr.bf16.mxu1 %v3708_v50 }
 0x34b   : > { %1321 = vmatpush1.bf16.msra.mxu0 %v2918_v16  ;;  %1362 = vmatpush1.bf16.msra.mxu1 %v2925_v17 }
 0x34c   : > { %1322 = vmatprep.subr.bf16.mxu0 %v2932_v18  ;;  %1363 = vmatprep.subr.bf16.mxu1 %v2940_v20  ;;  %v3711_v20 = vld [vmem:[#allocation13_spill] sm:$0xff] }
 0x34f   : > { %1323 = vmatpush1.bf16.msra.mxu0 %v2945_v21  ;;  %1364 = vmatpush1.bf16.msra.mxu1 %v2952_v22 }
 0x350   : > { %1324 = vmatprep.subr.bf16.mxu0 %v2959_v23  ;;  %1365 = vmatprep.subr.bf16.mxu1 %v2964_v24 }
 0x353   : > { %1325 = vmatpush1.bf16.msra.mxu0 %v2971_v25  ;;  %1366 = vmatpush1.bf16.msra.mxu1 %v2978_v26 }
 0x354   : > { %1326 = vmatprep.subr.bf16.mxu0 %v2985_v27  ;;  %1367 = vmatprep.subr.bf16.mxu1 %v2990_v28 }
 0x357   : > { %1327 = vmatpush1.bf16.msra.mxu0 %v2998_v30  ;;  %1368 = vmatpush1.bf16.msra.mxu1 %v3003_v31 }
 0x358   : > { %1328 = vmatprep.subr.bf16.mxu0 %v3010_v32  ;;  %1369 = vmatprep.subr.bf16.mxu1 %v3017_v33 }
 0x35b   : > { %1329 = vmatpush1.bf16.msra.mxu0 %v3024_v34  ;;  %1370 = vmatpush1.bf16.msra.mxu1 %v3029_v35 }
 0x35c   : > { %1330 = vmatprep.subr.bf16.mxu0 %v3036_v36  ;;  %1371 = vmatprep.subr.bf16.mxu1 %v3043_v37 }
 0x35f   : > { %1331 = vmatpush1.bf16.msra.mxu0 %v3051_v39  ;;  %1372 = vmatpush1.bf16.msra.mxu1 %v3056_v40 }
 0x360   : > { %1332 = vmatprep.subr.bf16.mxu0 %v3061_v41  ;;  %1373 = vmatprep.subr.bf16.mxu1 %v3066_v42 }
 0x363   : > { %1333 = vmatpush1.bf16.msra.mxu0 %v3075_v43  ;;  %1374 = vmatpush1.bf16.msra.mxu1 %v3080_v44 }
 0x364   : > { %1433 = vmatprep.subr.bf16.mxu0 %v2884_v10  ;;  %1474 = vmatprep.subr.bf16.mxu1 %v2889_v11 }
 0x406   : > { %v1237_v12 = vpop.f32.mrf.mxu0  ;;  %v1278_v13 = vpop.f32.mrf.mxu1 }
 0x407   : > { %v1285_v15 = vadd.f32 %v1237_v12, %v3710_v14  ;;  %v1287_v11 = vadd.f32 %v1278_v13, %v3713_v1  ;;  %v3413_v12 = vld [vmem:[%s3672_s2 + $0xa0] ss:$16 sps:$4 sm:$0xff]   ;;  %v3419_v13 = vld [vmem:[%s3672_s2 + $0xa8] ss:$16 sps:$4 sm:$0xff]   ;;  %v3425_v14 = vld [vmem:[%s3672_s2 + $0x84] ss:$16 sps:$4 sm:$0xff]  }
 0x408   : > { %v1239_v16 = vpop.f32.mrf.mxu0  ;;  %v1280_v17 = vpop.f32.mrf.mxu1 }
 0x409   : > { %v2293_v18 = vmul.f32 -1.442695, %v1285_v15  ;;  %v1286_v21 = vadd.f32 %v1239_v16, %v3711_v20  ;;  %v1288_v10 = vadd.f32 %v1280_v17, %v3712_v8  ;;  %v3431_v15 = vld [vmem:[%s3672_s2 + $0x8c] ss:$16 sps:$4 sm:$0xff]  }
 0x40a   : > { %v1241_v22 = vpop.f32.mrf.mxu0  ;;  %v1282_v23 = vpop.f32.mrf.mxu1  ;;  %v3717_v16 = vld [vmem:[#allocation16_spill] sm:$0xff] }
 0x40b   : > { %2552 = vpow2.f32 %v2293_v18  ;;  %v2294_v24 = vmul.f32 -1.442695, %v1286_v21  ;;  %v2295_v49 = vmul.f32 -1.442695, %v1288_v10 }
 0x40c   : > { %v1242_v4 = vpop.f32.mrf.mxu0  ;;  %v1283_v2 = vpop.f32.mrf.mxu1 }
 0x40d   : > { %2554 = vpow2.f32 %v2294_v24 }
 0x40e   : > { %2556 = vtanh.f32 %v1287_v11 }
 0x40f   : > { %2558 = vpow2.f32 %v2295_v49 }
 0x418   : > { %v2553_v9 = vpop.eup %2552 }
 0x419   : > { %v1292_v5 = vadd.f32 1.0, %v2553_v9 }
 0x41a   : > { %v2555_v56 = vpop.eup %2554 }
 0x41b   : > { %2560 = vrcp.f32 %v1292_v5  ;;  %v1298_v58 = vadd.f32 1.0, %v2555_v56  ;;  %v2557_v62 = vpop.eup %2556 }
 0x41c   : > { %v2559_v46 = vpop.eup %2558 }
 0x41d   : > { %2562 = vrcp.f32 %v1298_v58  ;;  %v1305_v60 = vadd.f32 1.0, %v2559_v46  ;;  %v3495_v46 = vld [vmem:[%s3672_s2 + $0x88] ss:$16 sps:$4 sm:$0xff]  }
 0x41f   : > { %2564 = vrcp.f32 %v1305_v60  ;;  %v3519_v60 = vld [vmem:[%s3672_s2 + $0x68] ss:$16 sps:$4 sm:$0xff]  }
 0x428   : > { %v2561_v3 = vpop.eup %2560 }
 0x429   : > { %v1309_v52 = vmul.f32 %v2561_v3, %v2557_v62  ;;  %v3489_v62 = vld [vmem:[%s3672_s2 + $0x80] ss:$16 sps:$4 sm:$0xff]   ;;  %v3501_v3 = vld [vmem:[%s3672_s2 + $0x64] ss:$16 sps:$4 sm:$0xff]  }
 0x42a   : > { %v2563_v53 = vpop.eup %2562 }
 0x42b   : > { %v1308_v7 = vmul.f32 %v2563_v53, %v3315_v38  ;;  %v3381_v38 = vld [vmem:[%s3672_s2 + $0xcc] ss:$16 sps:$4 sm:$0xff]   ;;  %v3513_v53 = vld [vmem:[%s3672_s2 + $0x60] ss:$16 sps:$4 sm:$0xff]  }
 0x42c   : > { %v2565_v29 = vpop.eup %2564 }
 0x42d   : > { %v3357_v51 = vadd.f32 %v1309_v52, %v1308_v7  ;;  %v3507_v52 = vld [vmem:[%s3672_s2 + $0x6c] ss:$16 sps:$4 sm:$0xff]   ;;  %v3525_v7 = vld [vmem:[%s3672_s2 + $0x44] ss:$16 sps:$4 sm:$0xff]  }
 0x42f   : > { %2566 = vtanh.f32 %v3357_v51 }
 0x43c   : > { %v2567_v6 = vpop.eup %2566 }
 0x43d   : > { %v1312_v19 = vmul.f32 %v2567_v6, %v2565_v29  ;;  %v3537_v29 = vld [vmem:[%s3672_s2 + $0x40] ss:$16 sps:$4 sm:$0xff]   ;;  %v3543_v6 = vld [vmem:[%s3672_s2 + $0x48] ss:$16 sps:$4 sm:$0xff]  }
 0x43f   : > { %v1317_v63 = vpack.c.bf16 %v1312_v19, %v1312_v19  ;;  %v3549_v19 = vld [vmem:[%s3672_s2 + $0x24] ss:$16 sps:$4 sm:$0xff]  }
 0x441   : > { %1351 = vmatmul.mubr.bf16.vlgmr.msra.gmra.mxu0 %v1317_v63  ;;  %1392 = vmatmul.mubr.bf16.vlgmr.msra.gmra.mxu1 %v1317_v63  ;;  %v3555_v63 = vld [vmem:[%s3672_s2 + $0x2c] ss:$16 sps:$4 sm:$0xff]  }
 0x442   : > { %1434 = vmatpush1.bf16.msra.mxu0 %v3363_v57  ;;  %1475 = vmatpush1.bf16.msra.mxu1 %v3369_v55 }
 0x443   : > { %1435 = vmatprep.subr.bf16.mxu0 %v3375_v48  ;;  %1476 = vmatprep.subr.bf16.mxu1 %v3381_v38 }
 0x444   : > { %1465 = vmatprep.mubr.bf16.mxu0 %v3708_v50  ;;  %1506 = vmatprep.mubr.bf16.mxu1 %v3708_v50 }
 0x446   : > { %1436 = vmatpush1.bf16.msra.mxu0 %v3389_v0  ;;  %1477 = vmatpush1.bf16.msra.mxu1 %v3395_v61 }
 0x447   : > { %1437 = vmatprep.subr.bf16.mxu0 %v3401_v47  ;;  %1478 = vmatprep.subr.bf16.mxu1 %v3407_v59 }
 0x44a   : > { %1438 = vmatpush1.bf16.msra.mxu0 %v3413_v12  ;;  %1479 = vmatpush1.bf16.msra.mxu1 %v3419_v13 }
 0x44b   : > { %1439 = vmatprep.subr.bf16.mxu0 %v3425_v14  ;;  %1480 = vmatprep.subr.bf16.mxu1 %v3431_v15 }
 0x44e   : > { %1440 = vmatpush1.bf16.msra.mxu0 %v2971_v25  ;;  %1481 = vmatpush1.bf16.msra.mxu1 %v2978_v26  ;;  %v3455_v25 = vld [vmem:[%s3672_s2 + $0xe4] ss:$16 sps:$4 sm:$0xff]   ;;  %v3461_v26 = vld [vmem:[%s3672_s2 + $0xec] ss:$16 sps:$4 sm:$0xff]  }
 0x44f   : > { %1441 = vmatprep.subr.bf16.mxu0 %v2985_v27  ;;  %1482 = vmatprep.subr.bf16.mxu1 %v2990_v28 }
 0x452   : > { %1442 = vmatpush1.bf16.msra.mxu0 %v2998_v30  ;;  %1483 = vmatpush1.bf16.msra.mxu1 %v3003_v31  ;;  %v3714_v30 = vld [vmem:[#allocation15_spill] sm:$0xff] }
 0x453   : > { %1443 = vmatprep.subr.bf16.mxu0 %v3010_v32  ;;  %1484 = vmatprep.subr.bf16.mxu1 %v3017_v33 }
 0x456   : > { %1444 = vmatpush1.bf16.msra.mxu0 %v3024_v34  ;;  %1485 = vmatpush1.bf16.msra.mxu1 %v3029_v35  ;;  %v3715_v35 = vld [vmem:[#allocation17_spill] sm:$0xff] }
 0x457   : > { %1445 = vmatprep.subr.bf16.mxu0 %v3036_v36  ;;  %1486 = vmatprep.subr.bf16.mxu1 %v3043_v37 }
 0x45a   : > { %1446 = vmatpush1.bf16.msra.mxu0 %v3051_v39  ;;  %1487 = vmatpush1.bf16.msra.mxu1 %v3056_v40 }
 0x45b   : > { %1447 = vmatprep.subr.bf16.mxu0 %v3061_v41  ;;  %1488 = vmatprep.subr.bf16.mxu1 %v3066_v42 }
 0x45e   : > { %1448 = vmatpush1.bf16.msra.mxu0 %v3075_v43  ;;  %1489 = vmatpush1.bf16.msra.mxu1 %v3080_v44  ;;  %v3716_v43 = vld [vmem:[#allocation18_spill] sm:$0xff] }
 0x45f   : > { %1548 = vmatprep.subr.bf16.mxu0 %v3455_v25  ;;  %1589 = vmatprep.subr.bf16.mxu1 %v3461_v26 }
 0x501   : > { %v1352_v27 = vpop.f32.mrf.mxu0  ;;  %v1393_v28 = vpop.f32.mrf.mxu1 }
 0x502   : > { %v1400_v31 = vadd.f32 %v1352_v27, %v3714_v30  ;;  %v1402_v17 = vadd.f32 %v1393_v28, %v3717_v16  ;;  %v3561_v27 = vld [vmem:[%s3672_s2 + $0x20] ss:$16 sps:$4 sm:$0xff]   ;;  %v3567_v28 = vld [vmem:[%s3672_s2 + $0x28] ss:$16 sps:$4 sm:$0xff]   ;;  %v3573_v30 = vld [vmem:[%s3672_s2 + $0x4] ss:$16 sps:$4 sm:$0xff]  }
 0x503   : > { %v1354_v32 = vpop.f32.mrf.mxu0  ;;  %v1395_v33 = vpop.f32.mrf.mxu1 }
 0x504   : > { %v2296_v34 = vmul.f32 -1.442695, %v1400_v31  ;;  %v1401_v36 = vadd.f32 %v1354_v32, %v3715_v35  ;;  %v1403_v44 = vadd.f32 %v1395_v33, %v3716_v43  ;;  %v3579_v31 = vld [vmem:[%s3672_s2 + $0xc] ss:$16 sps:$4 sm:$0xff]   ;;  %v3585_v32 = vld [vmem:[%s3672_s2] ss:$16 sps:$4 sm:$0xff]  }
 0x505   : > { %v1356_v37 = vpop.f32.mrf.mxu0  ;;  %v1397_v39 = vpop.f32.mrf.mxu1  ;;  %v3591_v33 = vld [vmem:[%s3672_s2 + $0x8] ss:$16 sps:$4 sm:$0xff]  }
 0x506   : > { %2568 = vpow2.f32 %v2296_v34  ;;  %v2297_v40 = vmul.f32 -1.442695, %v1401_v36  ;;  %v2298_v18 = vmul.f32 -1.442695, %v1403_v44  ;;  %v3718_v36 = vld [vmem:[#allocation19_spill] sm:$0xff] }
 0x507   : > { %v1357_v41 = vpop.f32.mrf.mxu0  ;;  %v1398_v42 = vpop.f32.mrf.mxu1 }
 0x508   : > { %2570 = vpow2.f32 %v2297_v40  ;;  %v3719_v42 = vld [vmem:[#allocation21_spill] sm:$0xff] }
 0x509   : > { %2572 = vtanh.f32 %v1402_v17 }
 0x50a   : > { %2574 = vpow2.f32 %v2298_v18 }
 0x513   : > { %v2569_v20 = vpop.eup %2568 }
 0x514   : > { %v1407_v21 = vadd.f32 1.0, %v2569_v20 }
 0x515   : > { %v2571_v22 = vpop.eup %2570 }
 0x516   : > { %2576 = vrcp.f32 %v1407_v21  ;;  %v1413_v23 = vadd.f32 1.0, %v2571_v22  ;;  %v2573_v24 = vpop.eup %2572  ;;  %v3720_v21 = vld [vmem:[#allocation22_spill] sm:$0xff]  ;;  %v3721_v22 = vld [vmem:[#allocation20_spill] sm:$0xff] }
 0x517   : > { %v2575_v4 = vpop.eup %2574 }
 0x518   : > { %2578 = vrcp.f32 %v1413_v23  ;;  %v1420_v1 = vadd.f32 1.0, %v2575_v4 }
 0x51a   : > { %2580 = vrcp.f32 %v1420_v1 }
 0x523   : > { %v2577_v2 = vpop.eup %2576 }
 0x524   : > { %v1424_v8 = vmul.f32 %v2577_v2, %v2573_v24 }
 0x525   : > { %v2579_v10 = vpop.eup %2578 }
 0x526   : > { %v1423_v11 = vmul.f32 %v2579_v10, %v3357_v51  ;;  %v3531_v51 = vld [vmem:[%s3672_s2 + $0x4c] ss:$16 sps:$4 sm:$0xff]  }
 0x527   : > { %v2581_v9 = vpop.eup %2580 }
 0x528   : > { %v3469_v49 = vadd.f32 %v1424_v8, %v1423_v11 }
 0x52a   : > { %2582 = vtanh.f32 %v3469_v49 }
 0x537   : > { %v2583_v5 = vpop.eup %2582 }
 0x538   : > { %v1427_v56 = vmul.f32 %v2583_v5, %v2581_v9 }
 0x53a   : > { %v1432_v58 = vpack.c.bf16 %v1427_v56, %v1427_v56 }
 0x53c   : > { %1466 = vmatmul.mubr.bf16.vlgmr.msra.gmra.mxu0 %v1432_v58  ;;  %1507 = vmatmul.mubr.bf16.vlgmr.msra.gmra.mxu1 %v1432_v58 }
 0x53d   : > { %1549 = vmatpush1.bf16.msra.mxu0 %v3363_v57  ;;  %1590 = vmatpush1.bf16.msra.mxu1 %v3369_v55 }
 0x53e   : > { %1550 = vmatprep.subr.bf16.mxu0 %v3375_v48  ;;  %1591 = vmatprep.subr.bf16.mxu1 %v3381_v38 }
 0x53f   : > { %1580 = vmatprep.mubr.bf16.mxu0 %v3708_v50  ;;  %1621 = vmatprep.mubr.bf16.mxu1 %v3708_v50 }
 0x541   : > { %1551 = vmatpush1.bf16.msra.mxu0 %v3389_v0  ;;  %1592 = vmatpush1.bf16.msra.mxu1 %v3395_v61 }
 0x542   : > { %1552 = vmatprep.subr.bf16.mxu0 %v3401_v47  ;;  %1593 = vmatprep.subr.bf16.mxu1 %v3407_v59 }
 0x545   : > { %1553 = vmatpush1.bf16.msra.mxu0 %v3413_v12  ;;  %1594 = vmatpush1.bf16.msra.mxu1 %v3419_v13 }
 0x546   : > { %1554 = vmatprep.subr.bf16.mxu0 %v3425_v14  ;;  %1595 = vmatprep.subr.bf16.mxu1 %v3431_v15 }
 0x549   : > { %1555 = vmatpush1.bf16.msra.mxu0 %v3489_v62  ;;  %1596 = vmatpush1.bf16.msra.mxu1 %v3495_v46 }
 0x54a   : > { %1556 = vmatprep.subr.bf16.mxu0 %v3501_v3  ;;  %1597 = vmatprep.subr.bf16.mxu1 %v3507_v52 }
 0x54d   : > { %1557 = vmatpush1.bf16.msra.mxu0 %v3513_v53  ;;  %1598 = vmatpush1.bf16.msra.mxu1 %v3519_v60 }
 0x54e   : > { %1558 = vmatprep.subr.bf16.mxu0 %v3525_v7  ;;  %1599 = vmatprep.subr.bf16.mxu1 %v3531_v51 }
 0x551   : > { %1559 = vmatpush1.bf16.msra.mxu0 %v3537_v29  ;;  %1600 = vmatpush1.bf16.msra.mxu1 %v3543_v6 }
 0x552   : > { %1560 = vmatprep.subr.bf16.mxu0 %v3549_v19  ;;  %1601 = vmatprep.subr.bf16.mxu1 %v3555_v63 }
 0x555   : > { %1561 = vmatpush1.bf16.msra.mxu0 %v3561_v27  ;;  %1602 = vmatpush1.bf16.msra.mxu1 %v3567_v28 }
 0x556   : > { %1562 = vmatprep.subr.bf16.mxu0 %v3573_v30  ;;  %1603 = vmatprep.subr.bf16.mxu1 %v3579_v31 }
 0x559   : > { %1563 = vmatpush1.bf16.msra.mxu0 %v3585_v32  ;;  %1604 = vmatpush1.bf16.msra.mxu1 %v3591_v33 }
 0x55a   : > { %1663 = vmatprep.subr.bf16.mxu0 %v3455_v25  ;;  %1704 = vmatprep.subr.bf16.mxu1 %v3461_v26 }
 0x5fc   : > { %v1467_v34 = vpop.f32.mrf.mxu0  ;;  %v1508_v35 = vpop.f32.mrf.mxu1 }
 0x5fd   : > { %v1515_v37 = vadd.f32 %v1467_v34, %v3718_v36  ;;  %v1517_v26 = vadd.f32 %v1508_v35, %v3721_v22  ;;  %v2473_v22 = vld [vmem:[#allocation3 + $0x40] ss:$8 sps:$4 sm:$0xff]  }
 0x5fe   : > { %v1469_v39 = vpop.f32.mrf.mxu0  ;;  %v1510_v40 = vpop.f32.mrf.mxu1 }
 0x5ff   : > { %v2299_v41 = vmul.f32 -1.442695, %v1515_v37  ;;  %v1516_v43 = vadd.f32 %v1469_v39, %v3719_v42  ;;  %v1518_v25 = vadd.f32 %v1510_v40, %v3720_v21  ;;  %v2470_v21 = vld [vmem:[#allocation3 + $0x50] ss:$8 sps:$4 sm:$0xff]  }
 0x600   : > { %v1471_v44 = vpop.f32.mrf.mxu0  ;;  %v1512_v16 = vpop.f32.mrf.mxu1 }
 0x601   : > { %2584 = vpow2.f32 %v2299_v41  ;;  %v2300_v17 = vmul.f32 -1.442695, %v1516_v43  ;;  %v2301_v23 = vmul.f32 -1.442695, %v1518_v25  ;;  %v2466_v44 = vld [vmem:[#allocation3 + $0x74] ss:$8 sps:$4 sm:$0xff]  }
 0x602   : > { %v1472_v18 = vpop.f32.mrf.mxu0  ;;  %v1513_v20 = vpop.f32.mrf.mxu1  ;;  %v2464_v16 = vld [vmem:[#allocation3 + $0x70] ss:$8 sps:$4 sm:$0xff]   ;;  %v2475_v25 = vld [vmem:[#allocation3 + $0x44] ss:$8 sps:$4 sm:$0xff]  }
 0x603   : > { %2586 = vpow2.f32 %v2300_v17  ;;  %v2469_v17 = vld [vmem:[#allocation3 + $0x64] ss:$8 sps:$4 sm:$0xff]   ;;  %v2467_v18 = vld [vmem:[#allocation3 + $0x60] ss:$8 sps:$4 sm:$0xff]   ;;  %v2472_v20 = vld [vmem:[#allocation3 + $0x54] ss:$8 sps:$4 sm:$0xff]  }
 0x604   : > { %2588 = vtanh.f32 %v1517_v26  ;;  %v2478_v26 = vld [vmem:[#allocation3 + $0x34] ss:$8 sps:$4 sm:$0xff]  }
 0x605   : > { %2590 = vpow2.f32 %v2301_v23  ;;  %v2476_v23 = vld [vmem:[#allocation3 + $0x30] ss:$8 sps:$4 sm:$0xff]  }
 0x60e   : > { %v2585_v24 = vpop.eup %2584 }
 0x60f   : > { %v1522_v4 = vadd.f32 1.0, %v2585_v24  ;;  %v2479_v24 = vld [vmem:[#allocation3 + $0x20] ss:$8 sps:$4 sm:$0xff]  }
 0x610   : > { %v2587_v2 = vpop.eup %2586 }
 0x611   : > { %2592 = vrcp.f32 %v1522_v4  ;;  %v1528_v8 = vadd.f32 1.0, %v2587_v2  ;;  %v2589_v10 = vpop.eup %2588  ;;  %v2484_v4 = vld [vmem:[#allocation3 + $0x14] ss:$8 sps:$4 sm:$0xff]   ;;  %v2482_v2 = vld [vmem:[#allocation3 + $0x10] ss:$8 sps:$4 sm:$0xff]  }
 0x612   : > { %v2591_v1 = vpop.eup %2590 }
 0x613   : > { %2594 = vrcp.f32 %v1528_v8  ;;  %v1535_v56 = vadd.f32 1.0, %v2591_v1  ;;  %v2487_v8 = vld [vmem:[#allocation3 + $0x4] ss:$8 sps:$4 sm:$0xff]   ;;  %v2488_v1 = vld [vmem:[#allocation5 + $0x78] sm:$0xff]  }
 0x615   : > { %2596 = vrcp.f32 %v1535_v56  ;;  %v2492_v56 = vld [vmem:[#allocation5 + $0x68] sm:$0xff]  }
 0x61e   : > { %v2593_v11 = vpop.eup %2592 }
 0x61f   : > { %v1539_v9 = vmul.f32 %v2593_v11, %v2589_v10  ;;  %v2485_v10 = vld [vmem:[#allocation3] ss:$8 sps:$4 sm:$0xff]   ;;  %v2489_v11 = vld [vmem:[#allocation5 + $0x38] sm:$0xff]  }
 0x620   : > { %v2595_v5 = vpop.eup %2594 }
 0x621   : > { %v1538_v58 = vmul.f32 %v2595_v5, %v3469_v49  ;;  %v2491_v5 = vld [vmem:[#allocation5 + $0x30] sm:$0xff]  }
 0x622   : > { %v2597_v35 = vpop.eup %2596 }
 0x623   : > { %v3601_v34 = vadd.f32 %v1539_v9, %v1538_v58  ;;  %v2490_v9 = vld [vmem:[#allocation5 + $0x70] sm:$0xff]   ;;  %v2493_v58 = vld [vmem:[#allocation5 + $0x28] sm:$0xff]  }
 0x625   : > { %2598 = vtanh.f32 %v3601_v34 }
 0x632   : > { %v2599_v36 = vpop.eup %2598 }
 0x633   : > { %v1542_v37 = vmul.f32 %v2599_v36, %v2597_v35  ;;  %v2495_v35 = vld [vmem:[#allocation5 + $0x20] sm:$0xff]   ;;  %v2496_v36 = vld [vmem:[#allocation5 + $0x58] sm:$0xff]  }
 0x635   : > { %v1547_v39 = vpack.c.bf16 %v1542_v37, %v1542_v37  ;;  %v2497_v37 = vld [vmem:[#allocation5 + $0x18] sm:$0xff]  }
 0x637   : > { %1581 = vmatmul.mubr.bf16.vlgmr.msra.gmra.mxu0 %v1547_v39  ;;  %1622 = vmatmul.mubr.bf16.vlgmr.msra.gmra.mxu1 %v1547_v39  ;;  %v2498_v39 = vld [vmem:[#allocation5 + $0x50] sm:$0xff]  }
 0x638   : > { %1664 = vmatpush1.bf16.msra.mxu0 %v3363_v57  ;;  %1705 = vmatpush1.bf16.msra.mxu1 %v3369_v55 }
 0x639   : > { %1665 = vmatprep.subr.bf16.mxu0 %v3375_v48  ;;  %1706 = vmatprep.subr.bf16.mxu1 %v3381_v38  ;;  %v3722_v48 = vld [vmem:[#allocation23_spill] sm:$0xff] }
 0x63a   : > { %1695 = vmatprep.mubr.bf16.mxu0 %v3708_v50  ;;  %1736 = vmatprep.mubr.bf16.mxu1 %v3708_v50 }
 0x63c   : > { %1666 = vmatpush1.bf16.msra.mxu0 %v3389_v0  ;;  %1707 = vmatpush1.bf16.msra.mxu1 %v3395_v61 }
 0x63d   : > { %1667 = vmatprep.subr.bf16.mxu0 %v3401_v47  ;;  %1708 = vmatprep.subr.bf16.mxu1 %v3407_v59  ;;  %v3723_v59 = vld [vmem:[#allocation25_spill] sm:$0xff] }
 0x640   : > { %1668 = vmatpush1.bf16.msra.mxu0 %v3413_v12  ;;  %1709 = vmatpush1.bf16.msra.mxu1 %v3419_v13 }
 0x641   : > { %1669 = vmatprep.subr.bf16.mxu0 %v3425_v14  ;;  %1710 = vmatprep.subr.bf16.mxu1 %v3431_v15 }
 0x644   : > { %1670 = vmatpush1.bf16.msra.mxu0 %v3489_v62  ;;  %1711 = vmatpush1.bf16.msra.mxu1 %v3495_v46  ;;  %v3724_v46 = vld [vmem:[#allocation26_spill] sm:$0xff] }
 0x645   : > { %1671 = vmatprep.subr.bf16.mxu0 %v3501_v3  ;;  %1712 = vmatprep.subr.bf16.mxu1 %v3507_v52  ;;  %v3725_v52 = vld [vmem:[#allocation24_spill] sm:$0xff] }
 0x648   : > { %1672 = vmatpush1.bf16.msra.mxu0 %v3513_v53  ;;  %1713 = vmatpush1.bf16.msra.mxu1 %v3519_v60 }
 0x649   : > { %1673 = vmatprep.subr.bf16.mxu0 %v3525_v7  ;;  %1714 = vmatprep.subr.bf16.mxu1 %v3531_v51 }
 0x64c   : > { %1674 = vmatpush1.bf16.msra.mxu0 %v3537_v29  ;;  %1715 = vmatpush1.bf16.msra.mxu1 %v3543_v6 }
 0x64d   : > { %1675 = vmatprep.subr.bf16.mxu0 %v3549_v19  ;;  %1716 = vmatprep.subr.bf16.mxu1 %v3555_v63 }
 0x650   : > { %1676 = vmatpush1.bf16.msra.mxu0 %v3561_v27  ;;  %1717 = vmatpush1.bf16.msra.mxu1 %v3567_v28 }
 0x651   : > { %1677 = vmatprep.subr.bf16.mxu0 %v3573_v30  ;;  %1718 = vmatprep.subr.bf16.mxu1 %v3579_v31 }
 0x654   : > { %1678 = vmatpush1.bf16.msra.mxu0 %v3585_v32  ;;  %1719 = vmatpush1.bf16.msra.mxu1 %v3591_v33 }
 0x655   : > { %1882 = vmatprep.subr.bf16.mxu0 %v2466_v44  ;;  %2344 = vmatprep.subr.bf16.mxu1 %v2488_v1  ;;  %v2502_v44 = vld [vmem:[#allocation5 + $0x40] sm:$0xff]  }
 0x6f7   : > { %v1582_v57 = vpop.f32.mrf.mxu0  ;;  %v1623_v55 = vpop.f32.mrf.mxu1 }
 0x6f8   : > { %v1630_v38 = vadd.f32 %v1582_v57, %v3722_v48  ;;  %v1632_v53 = vadd.f32 %v1623_v55, %v3725_v52  ;;  %v2499_v57 = vld [vmem:[#allocation5 + $0x10] sm:$0xff]  }
 0x6f9   : > { %v1584_v0 = vpop.f32.mrf.mxu0  ;;  %v1625_v61 = vpop.f32.mrf.mxu1 }
 0x6fa   : > { %v2302_v47 = vmul.f32 -1.442695, %v1630_v38  ;;  %v1631_v12 = vadd.f32 %v1584_v0, %v3723_v59  ;;  %v1633_v3 = vadd.f32 %v1625_v61, %v3724_v46  ;;  %v3726_v38 = vld [vmem:[#allocation27_spill] sm:$0xff] }
 0x6fb   : > { %v1586_v13 = vpop.f32.mrf.mxu0  ;;  %v1627_v14 = vpop.f32.mrf.mxu1 }
 0x6fc   : > { %2600 = vpow2.f32 %v2302_v47  ;;  %v2303_v15 = vmul.f32 -1.442695, %v1631_v12  ;;  %v2304_v60 = vmul.f32 -1.442695, %v1633_v3  ;;  %v3727_v3 = vld [vmem:[#allocation28_spill] sm:$0xff] }
 0x6fd   : > { %v1587_v49 = vpop.f32.mrf.mxu0  ;;  %v1628_v62 = vpop.f32.mrf.mxu1 }
 0x6fe   : > { %2602 = vpow2.f32 %v2303_v15 }
 0x6ff   : > { %2604 = vtanh.f32 %v1632_v53 }
 0x700   : > { %2606 = vpow2.f32 %v2304_v60 }
 0x709   : > { %v2601_v7 = vpop.eup %2600 }
 0x70a   : > { %v1637_v51 = vadd.f32 1.0, %v2601_v7 }
 0x70b   : > { %v2603_v29 = vpop.eup %2602 }
 0x70c   : > { %2608 = vrcp.f32 %v1637_v51  ;;  %v1643_v6 = vadd.f32 1.0, %v2603_v29  ;;  %v2605_v19 = vpop.eup %2604 }
 0x70d   : > { %v2607_v63 = vpop.eup %2606 }
 0x70e   : > { %2610 = vrcp.f32 %v1643_v6  ;;  %v1650_v31 = vadd.f32 1.0, %v2607_v63 }
 0x710   : > { %2612 = vrcp.f32 %v1650_v31 }
 0x719   : > { %v2609_v27 = vpop.eup %2608 }
 0x71a   : > { %v1654_v28 = vmul.f32 %v2609_v27, %v2605_v19 }
 0x71b   : > { %v2611_v30 = vpop.eup %2610 }
 0x71c   : > { %v1653_v32 = vmul.f32 %v2611_v30, %v3601_v34  ;;  %v2494_v34 = vld [vmem:[#allocation5 + $0x60] sm:$0xff]  }
 0x71d   : > { %v2613_v40 = vpop.eup %2612 }
 0x71e   : > { %v3641_v33 = vadd.f32 %v1654_v28, %v1653_v32 }
 0x720   : > { %2614 = vtanh.f32 %v3641_v33 }
 0x72d   : > { %v2615_v41 = vpop.eup %2614 }
 0x72e   : > { %v1657_v42 = vmul.f32 %v2615_v41, %v2613_v40 }
 0x730   : > { %v1662_v43 = vpack.c.bf16 %v1657_v42, %v1657_v42  ;;  %v2500_v42 = vld [vmem:[#allocation5 + $0x48] sm:$0xff]  }
 0x732   : > { %1696 = vmatmul.mubr.bf16.vlgmr.msra.gmra.mxu0 %v1662_v43  ;;  %1737 = vmatmul.mubr.bf16.vlgmr.msra.gmra.mxu1 %v1662_v43  ;;  %v2501_v43 = vld [vmem:[#allocation5 + $0x8] sm:$0xff]  }
 0x733   : > { %1914 = vmatprep.mubr.bf16.mxu0 %v3708_v50  ;;  %1883 = vmatpush1.bf16.msra.mxu0 %v2464_v16  ;;  %v2481_v50 = vld [vmem:[#allocation3 + $0x24] ss:$8 sps:$4 sm:$0xff]  }
 0x734   : > { %1884 = vmatprep.subr.bf16.mxu0 %v2469_v17  ;;  %2345 = vmatpush3.bf16.msra.mxu1 %v2489_v11  ;;  %v2503_v16 = vld [vmem:[#allocation5] sm:$0xff]  }
 0x735   : > { %2346 = vmatprep.subr.bf16.mxu1 %v2490_v9  ;;  %v3728_v17 = vld [vmem:[#allocation9_spill] sm:$0xff] }
 0x736   : > { %v2324_v9 = vld [vmem:[%s3677_s7] ss:$0 sm:$0xff] }
 0x737   : > { %1885 = vmatpush1.bf16.msra.mxu0 %v2467_v18  ;;  %v3729_v18 = vsub.s32 0, %v3728_v17 }
 0x738   : > { %1886 = vmatprep.subr.bf16.mxu0 %v2472_v20  ;;  %2347 = vmatpush3.bf16.msra.mxu1 %v2491_v5 }
 0x739   : > { %2348 = vmatprep.subr.bf16.mxu1 %v2492_v56 }
 0x73b   : > { %1887 = vmatpush1.bf16.msra.mxu0 %v2470_v21  ;;  %v3730_v21 = vsub.s32 1, %v3728_v17 }
 0x73c   : > { %1888 = vmatprep.subr.bf16.mxu0 %v2475_v25  ;;  %2349 = vmatpush3.bf16.msra.mxu1 %v2493_v58 }
 0x73d   : > { %2350 = vmatprep.subr.bf16.mxu1 %v2494_v34 }
 0x73f   : > { %1889 = vmatpush1.bf16.msra.mxu0 %v2473_v22 }
 0x740   : > { %1890 = vmatprep.subr.bf16.mxu0 %v2478_v26  ;;  %2351 = vmatpush3.bf16.msra.mxu1 %v2495_v35 }
 0x741   : > { %2352 = vmatprep.subr.bf16.mxu1 %v2496_v36 }
 0x743   : > { %1891 = vmatpush1.bf16.msra.mxu0 %v2476_v23 }
 0x744   : > { %1892 = vmatprep.subr.bf16.mxu0 %v2481_v50  ;;  %2353 = vmatpush3.bf16.msra.mxu1 %v2497_v37 }
 0x745   : > { %2354 = vmatprep.subr.bf16.mxu1 %v2498_v39 }
 0x747   : > { %1893 = vmatpush1.bf16.msra.mxu0 %v2479_v24 }
 0x748   : > { %1894 = vmatprep.subr.bf16.mxu0 %v2484_v4  ;;  %2355 = vmatpush3.bf16.msra.mxu1 %v2499_v57 }
 0x749   : > { %2356 = vmatprep.subr.bf16.mxu1 %v2500_v42 }
 0x74b   : > { %1895 = vmatpush1.bf16.msra.mxu0 %v2482_v2 }
 0x74c   : > { %1896 = vmatprep.subr.bf16.mxu0 %v2487_v8  ;;  %2357 = vmatpush3.bf16.msra.mxu1 %v2501_v43 }
 0x74d   : > { %2358 = vmatprep.subr.bf16.mxu1 %v2502_v44 }
 0x74f   : > { %1897 = vmatpush1.bf16.msra.mxu0 %v2485_v10 }
 0x750   : > { %2359 = vmatpush3.bf16.msra.mxu1 %v2503_v16 }
 0x7f2   : > { %v1697_v55 = vpop.f32.mrf.mxu0  ;;  %v1738_v48 = vpop.f32.mrf.mxu1 }
 0x7f3   : > { %v1745_v0 = vadd.f32 %v1697_v55, %v3726_v38  ;;  %v1747_v52 = vadd.f32 %v1738_v48, %v3727_v3 }
 0x7f4   : > { %v1699_v61 = vpop.f32.mrf.mxu0  ;;  %v1740_v47 = vpop.f32.mrf.mxu1 }
 0x7f5   : > { %v2305_v59 = vmul.f32 -1.442695, %v1745_v0  ;;  %v1746_v12 = vadd.f32 %v1699_v61, %v3221_v54  ;;  %v1748_v46 = vadd.f32 %v1740_v47, %v3224_v45 }
 0x7f6   : > { %v1701_v13 = vpop.f32.mrf.mxu0  ;;  %v1742_v14 = vpop.f32.mrf.mxu1 }
 0x7f7   : > { %2616 = vpow2.f32 %v2305_v59  ;;  %v2306_v15 = vmul.f32 -1.442695, %v1746_v12  ;;  %v2307_v53 = vmul.f32 -1.442695, %v1748_v46 }
 0x7f8   : > { %v1702_v49 = vpop.f32.mrf.mxu0  ;;  %v1743_v62 = vpop.f32.mrf.mxu1 }
 0x7f9   : > { %2618 = vpow2.f32 %v2306_v15 }
 0x7fa   : > { %2620 = vtanh.f32 %v1747_v52 }
 0x7fb   : > { %2622 = vpow2.f32 %v2307_v53 }
 0x804   : > { %v2617_v60 = vpop.eup %2616 }
 0x805   : > { %v1752_v7 = vadd.f32 1.0, %v2617_v60 }
 0x806   : > { %v2619_v51 = vpop.eup %2618 }
 0x807   : > { %2624 = vrcp.f32 %v1752_v7  ;;  %v1758_v29 = vadd.f32 1.0, %v2619_v51  ;;  %v2621_v54 = vpop.eup %2620 }
 0x808   : > { %v2623_v6 = vpop.eup %2622 }
 0x809   : > { %2626 = vrcp.f32 %v1758_v29  ;;  %v1765_v28 = vadd.f32 1.0, %v2623_v6 }
 0x80b   : > { %2628 = vrcp.f32 %v1765_v28 }
 0x814   : > { %v2625_v19 = vpop.eup %2624 }
 0x815   : > { %v1769_v63 = vmul.f32 %v2625_v19, %v2621_v54 }
 0x816   : > { %v2627_v27 = vpop.eup %2626 }
 0x817   : > { %v1768_v30 = vmul.f32 %v2627_v27, %v3641_v33  ;;  %v1790_v33 = vld [vmem:[%s3675_s5] sm:$0x3] }
 0x818   : > { %v2629_v31 = vpop.eup %2628  ;;  %v1795_v20 = vrot.slane %v1790_v33, %v3729_v18  ;;  %v1799_v25 = vrot.slane %v1790_v33, %v3730_v21 }
 0x819   : > { %v1770_v45 = vadd.f32 %v1769_v63, %v1768_v30 }
 0x81b   : > { %2630 = vtanh.f32 %v1770_v45 }
 0x828   : > { %v2631_v32 = vpop.eup %2630 }
 0x829   : > { %v1772_v40 = vmul.f32 %v2631_v32, %v2629_v31 }
 0x82b   : > { %v1773_v41 = vpack.c.bf16 %v1772_v40, %v1772_v40 }
 0x82d   : > { %1915 = vmatmul.mubr.bf16.vlgmr.msra.gmra.mxu0 %v1773_v41 }
 0x8ed   : > { %v1916_v22 = vpop.f32.mrf.mxu0 }
 0x8ee   : > { %v1917_v26 = vadd.f32 %v1916_v22, %v1795_v20 }
 0x8ef   : > { %v1918_v23 = vpop.f32.mrf.mxu0 }
 0x8f0   : > { %v1919_v50 = vadd.f32 %v1918_v23, %v1799_v25  ;;  %v1923_v24 = vmax.f32 %v1917_v26, 0.0 }
 0x8f1   : > { %v1920_v4 = vpop.f32.mrf.mxu0 }
 0x8f2   : > { %v1924_v2 = vmax.f32 %v1919_v50, 0.0  ;;  %v1925_v1 = vpack.c.bf16 %v1923_v24, %v1923_v24 }
 0x8f3   : > { %v1921_v8 = vpop.f32.mrf.mxu0 }
 0x8f4   : > { %v1926_v10 = vpack.c.bf16 %v1924_v2, %v1924_v2 }
 0x8f6   : > { %2094 = vmatprep.mubr.bf16.mxu1 %v1926_v10 }
 0x8f7   : > { %2095 = vmatmul.mubr.bf16.vlgmr.msra.gmra.mxu1 %v1925_v1 }
 0x9b7   : > { %v2360_v11 = vpop.f32.mrf.mxu1 }
 0x9b9   : > { %v2361_v5 = vpop.f32.mrf.mxu1 }
 0x9ba   : > { %v2362_v56 = vadd.f32 %v2361_v5, %v2360_v11 }
 0x9bb   : > { %v2363_v58 = vpop.f32.mrf.mxu1 }
 0x9bc   : > { %v2097_v34 = vadd.f32 %v2362_v56, %v2324_v9 }
 0x9bd   : > { %v2364_v35 = vpop.f32.mrf.mxu1 }
 0x9be   : > { %2102 = vst [vmem:[%s367_s15] sm:$0xff] %v2097_v34  ;;  %2103 = vmax.xlane.f32.xlu0 %v2097_v34 }
 0xa47   : > { %v2104_v36 = vpop.xlane.xlu0 %2103 }
 0xa48   : > { %v2105_v37 = vsub.f32 %v2097_v34, %v2104_v36 }
 0xa4a   : > { %v2106_v39 = vmul.f32 1.442695, %v2105_v37 }
 0xa4c   : > { %2632 = vpow2.f32 %v2106_v39 }
 0xa59   : > { %v2633_v57 = vpop.eup %2632 }
 0xa5a   : > { %2108 = vadd.xlane.f32.xlu0 %v2633_v57 }
 0xae3   : > { %v2109_v55 = vpop.xlane.xlu0 %2108 }
 0xae4   : > { %2634 = vrcp.f32 %v2109_v55 }
 0xaf1   : > { %v2635_v48 = vpop.eup %2634 }
 0xaf2   : > { %v2111_v38 = vmul.f32 %v2635_v48, %v2633_v57 }
 0xaf4   : > { %2112 = vst [vmem:[%s371_s17] sm:$0xff] %v2111_v38 }
 0xaf5 PF: > { %s22_s30 = sadd.s32 1, %s2734_s30  }
 0xaf6   : > { %p19_p2 = scmp.ge.s32.totalorder %s22_s30, 4  }
 0xaf8   :  { %21 = sbr.rel (!%p19_p2) target bundleno = 2 (0x2), region = 103 }
 0xafd   :  { %2146 = vsyncpa [#allocation4], 1 }
 0xafe   :  { %2148 = vsyncpa [#allocation4 + $0x1], 1 }
 0xaff   :  { %2149 = vsyncpa [#allocation6], 1 }

</bundles_post_ra>
